<compile_context>
chip_gen: v7x
topology: tpu7x:2x2x1
jax: 0.10.0
libtpu: 0.0.40
codegen_flags: <defaults>
</compile_context>

<pallas_src>
import math

import jax
import jax.numpy as jnp
from jax.experimental import pallas as pl
from jax.experimental.pallas import tpu as pltpu

# Model hyperparameters (small synthetic config consistent with the module).
HIDDEN = 32          # config.hidden_dim
NUM_HEADS = 4        # config.num_attention_heads
HEAD_DIM = 8         # config.head_dim  (num_heads * head_dim == hidden_dim)
INTER = 64           # config.intermediate_size
EPS = 1e-5           # nn.RMSNorm eps
LANE = 128           # TPU lane width; row-space tensors are padded to this


def llada_block_kernel(x_ref, mask_ref,
                       rn1_ref, w_qkv_ref, wo_ref,
                       rn2_ref, w_up_ref, w_gu_ref, b_gu_ref, w_down_ref,
                       out_ref):
    """One grid step == one batch element.  x_ref block is (1, S, LANE)."""
    S = x_ref.shape[1]
    x = x_ref[0]                        # (S, LANE) f32; lanes >= HIDDEN are 0
    key_mask = mask_ref[0]              # (1, S)    f32 additive key mask

    inv_d = 1.0 / HIDDEN

    # ---- RMSNorm 1 (over the true HIDDEN lanes; padding lanes are zero) ----
    ms = jnp.sum(x * x, axis=-1, keepdims=True) * inv_d
    xn = x * jax.lax.rsqrt(ms + EPS) * rn1_ref[...]

    # ---- fused Q/K/V projection: (S, LANE) @ (LANE, 3*HIDDEN), bf16 x bf16 ->
    #      f32 accumulate ----
    qkv = jnp.dot(xn.astype(jnp.bfloat16), w_qkv_ref[...],
                  preferred_element_type=jnp.float32)          # (S, 3*HIDDEN)

    def heads(z):                       # (S, HIDDEN) -> (H, S, HEAD_DIM)
        return z.reshape(S, NUM_HEADS, HEAD_DIM).swapaxes(0, 1)

    q = heads(qkv[:, 0 * HIDDEN:1 * HIDDEN])
    k = heads(qkv[:, 1 * HIDDEN:2 * HIDDEN])
    v = heads(qkv[:, 2 * HIDDEN:3 * HIDDEN])

    # ---- attention: bf16 matmul operands, f32 scores / mask / softmax ----
    # (At real LLaDA head_dim=128 the contraction and output lanes are MXU
    #  friendly; at the toy head_dim=8 this is inherently small.)
    scale = 1.0 / math.sqrt(HEAD_DIM)
    s = jnp.einsum('hqd,hkd->hqk',
                   q.astype(jnp.bfloat16), k.astype(jnp.bfloat16),
                   preferred_element_type=jnp.float32) * scale  # (H, S, S) f32
    s = s + key_mask[None, :, :]        # broadcast over heads and query rows
    m = jnp.max(s, axis=-1, keepdims=True)
    e = jnp.exp(s - m)
    p = e / jnp.sum(e, axis=-1, keepdims=True)      # exact divide (f32)
    # dropout p = 0.0 (eval) -> identity
    ctx = jnp.einsum('hqk,hkd->hqd',
                     p.astype(jnp.bfloat16), v.astype(jnp.bfloat16),
                     preferred_element_type=jnp.float32)        # (H, S, Hd)
    attn = ctx.swapaxes(0, 1).reshape(S, HIDDEN)                # merge heads

    # ---- o-projection (wo is zero-padded to LANE output cols) ----
    attn_proj = jnp.dot(attn.astype(jnp.bfloat16), wo_ref[...],
                        preferred_element_type=jnp.float32)     # (S, LANE)
    residual1 = x + attn_proj                                   # f32

    # ---- RMSNorm 2 ----
    ms2 = jnp.sum(residual1 * residual1, axis=-1, keepdims=True) * inv_d
    xn2 = residual1 * jax.lax.rsqrt(ms2 + EPS) * rn2_ref[...]

    # ---- FFN: Linear(d -> 2I), fused (w1||w2) SwiGLU matmul, Linear(I -> d) --
    h1 = jnp.dot(xn2.astype(jnp.bfloat16), w_up_ref[...],
                 preferred_element_type=jnp.float32)            # (S, 2I=128)
    gu = jnp.dot(h1.astype(jnp.bfloat16), w_gu_ref[...],
                 preferred_element_type=jnp.float32) + b_gu_ref[...]  # (S, 128)
    g = gu[:, :INTER]
    u = gu[:, INTER:]
    swi = g * jax.nn.sigmoid(g) * u                             # silu(g)*u, f32
    ffn = jnp.dot(swi.astype(jnp.bfloat16), w_down_ref[...],
                  preferred_element_type=jnp.float32)           # (S, LANE)

    # Lane-dense (128-wide) unmasked store; padding lanes are exactly zero.
    out_ref[0] = residual1 + ffn


def _pad_last(a, target):
    pad = target - a.shape[-1]
    if pad <= 0:
        return a
    return jnp.pad(a, [(0, 0)] * (a.ndim - 1) + [(0, pad)])


def _pad_rows(a, target):
    pad = target - a.shape[0]
    if pad <= 0:
        return a
    return jnp.pad(a, [(0, pad)] + [(0, 0)] * (a.ndim - 1))


def llada_transformer_block(x, attention_mask, params):
    """x: (B, S, D) f32; attention_mask: (B, S) additive f32 mask."""
    B, S, D = x.shape
    assert D == HIDDEN
    (rn1_w, wq, wk, wv, wo, rn2_w, w_up, w1, b1, w2, b2, w_down) = params

    # Weight packing / zero-padding / bf16 cast — done once per call in XLA.
    w_qkv = _pad_rows(jnp.concatenate([wq, wk, wv], axis=1),
                      LANE).astype(jnp.bfloat16)              # (LANE, 3D)
    wo_p = _pad_last(wo, LANE).astype(jnp.bfloat16)           # (D,   LANE)
    w_up_p = _pad_rows(w_up, LANE).astype(jnp.bfloat16)       # (LANE, 2I)
    w_gu = jnp.concatenate([w1, w2], axis=1).astype(jnp.bfloat16)   # (2I, 2I)
    b_gu = jnp.concatenate([b1, b2], axis=1)                  # (1, 2I) f32
    w_down_p = _pad_last(w_down, LANE).astype(jnp.bfloat16)   # (I,   LANE)
    rn1_p = _pad_last(rn1_w, LANE)                            # (1, LANE) f32
    rn2_p = _pad_last(rn2_w, LANE)                            # (1, LANE) f32

    x_pad = _pad_last(x, LANE)                                # (B, S, LANE) f32
    mask3 = attention_mask.reshape(B, 1, S).astype(jnp.float32)

    row_spec = pl.BlockSpec((1, S, LANE), lambda b: (b, 0, 0))
    mask_spec = pl.BlockSpec((1, 1, S), lambda b: (b, 0, 0))

    def wspec(shape):
        # Constant index_map: fetched into VMEM once, never re-DMA'd per step.
        return pl.BlockSpec(shape, lambda b: (0,) * len(shape))

    out_pad = pl.pallas_call(
        llada_block_kernel,
        out_shape=jax.ShapeDtypeStruct((B, S, LANE), jnp.float32),
        grid=(B,),
        in_specs=[
            row_spec, mask_spec,
            wspec(rn1_p.shape), wspec(w_qkv.shape), wspec(wo_p.shape),
            wspec(rn2_p.shape), wspec(w_up_p.shape), wspec(w_gu.shape),
            wspec(b_gu.shape), wspec(w_down_p.shape),
        ],
        out_specs=row_spec,
        compiler_params=pltpu.CompilerParams(
            dimension_semantics=("parallel",),      # shards batch over v7x TCs
            vmem_limit_bytes=48 * 1024 * 1024),
    )(x_pad, mask3, rn1_p, w_qkv, wo_p, rn2_p, w_up_p, w_gu, b_gu, w_down_p)

    return out_pad[..., :HIDDEN]


def reference(x, mask, params):
    (rn1_w, wq, wk, wv, wo, rn2_w, w_up, w1, b1, w2, b2, w_down) = params

    def rms(z, w):
        return z * jax.lax.rsqrt(jnp.mean(z * z, -1, keepdims=True) + EPS) * w

    B, S, D = x.shape
    xn = rms(x, rn1_w)
    q = xn @ wq
    k = xn @ wk
    v = xn @ wv
    qh = q.reshape(B, S, NUM_HEADS, HEAD_DIM).transpose(0, 2, 1, 3)
    kh = k.reshape(B, S, NUM_HEADS, HEAD_DIM).transpose(0, 2, 1, 3)
    vh = v.reshape(B, S, NUM_HEADS, HEAD_DIM).transpose(0, 2, 1, 3)
    s = jnp.einsum('bhqd,bhkd->bhqk', qh, kh) / math.sqrt(HEAD_DIM)
    s = s + mask[:, None, None, :]
    p = jax.nn.softmax(s, axis=-1)
    o = jnp.einsum('bhqk,bhkd->bhqd', p, vh).transpose(0, 2, 1, 3).reshape(B, S, D)
    r1 = x + o @ wo
    xn2 = rms(r1, rn2_w)
    h1 = xn2 @ w_up
    g = h1 @ w1 + b1
    u = h1 @ w2 + b2
    return r1 + (jax.nn.silu(g) * u) @ w_down


def make_params(key):
    ks = jax.random.split(key, 12)
    scale = 0.05
    rn1_w = jnp.ones((1, HIDDEN), jnp.float32)
    rn2_w = jnp.ones((1, HIDDEN), jnp.float32)
    wq = scale * jax.random.normal(ks[0], (HIDDEN, HIDDEN), jnp.float32)
    wk = scale * jax.random.normal(ks[1], (HIDDEN, HIDDEN), jnp.float32)
    wv = scale * jax.random.normal(ks[2], (HIDDEN, HIDDEN), jnp.float32)
    wo = scale * jax.random.normal(ks[3], (HIDDEN, HIDDEN), jnp.float32)
    w_up = scale * jax.random.normal(ks[4], (HIDDEN, 2 * INTER), jnp.float32)
    w1 = scale * jax.random.normal(ks[5], (2 * INTER, INTER), jnp.float32)
    b1 = scale * jax.random.normal(ks[6], (1, INTER), jnp.float32)
    w2 = scale * jax.random.normal(ks[7], (2 * INTER, INTER), jnp.float32)
    b2 = scale * jax.random.normal(ks[8], (1, INTER), jnp.float32)
    w_down = scale * jax.random.normal(ks[9], (INTER, HIDDEN), jnp.float32)
    return (rn1_w, wq, wk, wv, wo, rn2_w, w_up, w1, b1, w2, b2, w_down)


if __name__ == "__main__":
    key = jax.random.PRNGKey(0)
    k_x, k_p = jax.random.split(key)

    B, S = 2, 8
    x = jax.random.normal(k_x, (B, S, HIDDEN), jnp.float32)

    # Additive attention mask (B, S): 0.0 = attend, -1e9 = masked key.
    mask = jnp.zeros((B, S), jnp.float32)
    mask = mask.at[1, -2:].set(-1e9)

    params = make_params(k_p)

    out = llada_transformer_block(x, mask, params)
    out = jax.block_until_ready(out)

    ref = reference(x, mask, params)
    assert out.shape == (B, S, HIDDEN)
    # Tolerance accounts for bf16 matmul operands (f32 accumulation) vs the
    # pure-f32 reference; softmax itself is computed exactly in f32.
    assert jnp.allclose(out, ref, rtol=2e-2, atol=2e-2), "mismatch vs reference"

    print("KERNEL_OK")
</pallas_src>

<mosaic_0001>
module attributes {stable_mosaic.version = 11 : i64} {
  func.func @llada_block_kernel(%arg0: i32, %arg1: memref<1x8x128xf32, #tpu.memory_space<vmem>>, %arg2: memref<1x1x8xf32, #tpu.memory_space<vmem>>, %arg3: memref<1x128xf32, #tpu.memory_space<vmem>>, %arg4: memref<128x96xbf16, #tpu.memory_space<vmem>>, %arg5: memref<32x128xbf16, #tpu.memory_space<vmem>>, %arg6: memref<1x128xf32, #tpu.memory_space<vmem>>, %arg7: memref<128x128xbf16, #tpu.memory_space<vmem>>, %arg8: memref<128x128xbf16, #tpu.memory_space<vmem>>, %arg9: memref<1x128xf32, #tpu.memory_space<vmem>>, %arg10: memref<64x128xbf16, #tpu.memory_space<vmem>>, %arg11: memref<1x8x128xf32, #tpu.memory_space<vmem>>) attributes {dimension_semantics = [#tpu.dimension_semantics<parallel>], iteration_bounds = array<i64: 2>, scalar_prefetch = 0 : i64, scratch_operands = 0 : i64, tpu.core_type = #tpu.core_type<tc>, window_params = [{transform_indices = @transform_0, window_bounds = array<i64: 1, 8, 128>}, {transform_indices = @transform_1, window_bounds = array<i64: 1, 1, 8>}, {pipeline_mode = #tpu.pipeline_mode<synchronous>, transform_indices = @transform_2, window_bounds = array<i64: 1, 128>}, {pipeline_mode = #tpu.pipeline_mode<synchronous>, transform_indices = @transform_3, window_bounds = array<i64: 128, 96>}, {pipeline_mode = #tpu.pipeline_mode<synchronous>, transform_indices = @transform_4, window_bounds = array<i64: 32, 128>}, {pipeline_mode = #tpu.pipeline_mode<synchronous>, transform_indices = @transform_5, window_bounds = array<i64: 1, 128>}, {pipeline_mode = #tpu.pipeline_mode<synchronous>, transform_indices = @transform_6, window_bounds = array<i64: 128, 128>}, {pipeline_mode = #tpu.pipeline_mode<synchronous>, transform_indices = @transform_7, window_bounds = array<i64: 128, 128>}, {pipeline_mode = #tpu.pipeline_mode<synchronous>, transform_indices = @transform_8, window_bounds = array<i64: 1, 128>}, {pipeline_mode = #tpu.pipeline_mode<synchronous>, transform_indices = @transform_9, window_bounds = array<i64: 64, 128>}, {transform_indices = @transform_10, window_bounds = array<i64: 1, 8, 128>}]} {
    %c0 = arith.constant 0 : index
    %c0_0 = arith.constant 0 : index
    %c0_1 = arith.constant 0 : index
    %0 = vector.load %arg1[%c0, %c0_0, %c0_1] : memref<1x8x128xf32, #tpu.memory_space<vmem>>, vector<1x8x128xf32>
    %1 = vector.shape_cast %0 : vector<1x8x128xf32> to vector<8x128xf32>
    %c0_2 = arith.constant 0 : index
    %c0_3 = arith.constant 0 : index
    %c0_4 = arith.constant 0 : index
    %2 = vector.load %arg2[%c0_2, %c0_3, %c0_4] : memref<1x1x8xf32, #tpu.memory_space<vmem>>, vector<1x1x8xf32>
    %3 = vector.shape_cast %2 : vector<1x1x8xf32> to vector<1x8xf32>
    %4 = arith.mulf %1, %1 : vector<8x128xf32>
    %cst = arith.constant dense<0.000000e+00> : vector<8xf32>
    %5 = vector.multi_reduction <add>, %4, %cst [1] : vector<8x128xf32> to vector<8xf32>
    %6 = vector.shape_cast %5 : vector<8xf32> to vector<8x1xf32>
    %cst_5 = arith.constant 3.125000e-02 : f32
    %7 = vector.broadcast %cst_5 : f32 to vector<8x1xf32>
    %8 = arith.mulf %6, %7 : vector<8x1xf32>
    %cst_6 = arith.constant 9.99999974E-6 : f32
    %9 = vector.broadcast %cst_6 : f32 to vector<8x1xf32>
    %10 = arith.addf %8, %9 : vector<8x1xf32>
    %11 = math.rsqrt %10 : vector<8x1xf32>
    %12 = vector.broadcast %11 : vector<8x1xf32> to vector<8x128xf32>
    %13 = arith.mulf %1, %12 : vector<8x128xf32>
    %c0_7 = arith.constant 0 : index
    %c0_8 = arith.constant 0 : index
    %14 = vector.load %arg3[%c0_7, %c0_8] : memref<1x128xf32, #tpu.memory_space<vmem>>, vector<1x128xf32>
    %15 = vector.broadcast %14 : vector<1x128xf32> to vector<8x128xf32>
    %16 = arith.mulf %13, %15 : vector<8x128xf32>
    %17 = arith.truncf %16 : vector<8x128xf32> to vector<8x128xbf16>
    %c0_9 = arith.constant 0 : index
    %c0_10 = arith.constant 0 : index
    %18 = vector.load %arg4[%c0_9, %c0_10] : memref<128x96xbf16, #tpu.memory_space<vmem>>, vector<128x96xbf16>
    %cst_11 = arith.constant dense<0.000000e+00> : vector<8x96xf32>
    %19 = tpu.matmul %17, %18, %cst_11 {dimension_numbers = #tpu.dot_dimension_numbers<[1], [0], [0], [1], [0, 0, 1, 1], [], []>} : vector<8x128xbf16>, vector<128x96xbf16>, vector<8x96xf32> -> vector<8x96xf32>
    %20 = vector.extract_strided_slice %19 {offsets = [0, 0], sizes = [8, 32], strides = [1, 1]} : vector<8x96xf32> to vector<8x32xf32>
    %21 = vector.shape_cast %20 : vector<8x32xf32> to vector<8x4x8xf32>
    %22 = tpu.transpose %21, [1, 0, 2] : vector<8x4x8xf32> -> vector<4x8x8xf32>
    %23 = vector.extract_strided_slice %19 {offsets = [0, 32], sizes = [8, 32], strides = [1, 1]} : vector<8x96xf32> to vector<8x32xf32>
    %24 = vector.shape_cast %23 : vector<8x32xf32> to vector<8x4x8xf32>
    %25 = tpu.transpose %24, [1, 0, 2] : vector<8x4x8xf32> -> vector<4x8x8xf32>
    %26 = vector.extract_strided_slice %19 {offsets = [0, 64], sizes = [8, 32], strides = [1, 1]} : vector<8x96xf32> to vector<8x32xf32>
    %27 = vector.shape_cast %26 : vector<8x32xf32> to vector<8x4x8xf32>
    %28 = tpu.transpose %27, [1, 0, 2] : vector<8x4x8xf32> -> vector<4x8x8xf32>
    %29 = arith.truncf %22 : vector<4x8x8xf32> to vector<4x8x8xbf16>
    %30 = arith.truncf %25 : vector<4x8x8xf32> to vector<4x8x8xbf16>
    "tpu.trace_start"() <{level = 10 : i32, message = "hqd,hkd->hqk"}> : () -> ()
    %cst_12 = arith.constant dense<0.000000e+00> : vector<4x8x8xf32>
    %31 = tpu.matmul %29, %30, %cst_12 {dimension_numbers = #tpu.dot_dimension_numbers<[2], [2], [1], [1], [0, 0, 0, 1, 1, 1], [0], [0]>} : vector<4x8x8xbf16>, vector<4x8x8xbf16>, vector<4x8x8xf32> -> vector<4x8x8xf32>
    "tpu.trace_stop"() : () -> ()
    %cst_13 = arith.constant 0.353553385 : f32
    %32 = vector.broadcast %cst_13 : f32 to vector<4x8x8xf32>
    %33 = arith.mulf %31, %32 : vector<4x8x8xf32>
    %34 = vector.shape_cast %3 : vector<1x8xf32> to vector<1x1x8xf32>
    %35 = vector.broadcast %34 : vector<1x1x8xf32> to vector<4x8x8xf32>
    %36 = arith.addf %33, %35 : vector<4x8x8xf32>
    %cst_14 = arith.constant dense<0xFF800000> : vector<4x8xf32>
    %37 = vector.multi_reduction <maximumf>, %36, %cst_14 [2] : vector<4x8x8xf32> to vector<4x8xf32>
    %38 = vector.shape_cast %37 : vector<4x8xf32> to vector<4x8x1xf32>
    %39 = vector.broadcast %38 : vector<4x8x1xf32> to vector<4x8x8xf32>
    %40 = arith.subf %36, %39 : vector<4x8x8xf32>
    %41 = math.exp %40 : vector<4x8x8xf32>
    %cst_15 = arith.constant dense<0.000000e+00> : vector<4x8xf32>
    %42 = vector.multi_reduction <add>, %41, %cst_15 [2] : vector<4x8x8xf32> to vector<4x8xf32>
    %43 = vector.shape_cast %42 : vector<4x8xf32> to vector<4x8x1xf32>
    %44 = vector.broadcast %43 : vector<4x8x1xf32> to vector<4x8x8xf32>
    %45 = arith.divf %41, %44 : vector<4x8x8xf32>
    %46 = arith.truncf %45 : vector<4x8x8xf32> to vector<4x8x8xbf16>
    %47 = arith.truncf %28 : vector<4x8x8xf32> to vector<4x8x8xbf16>
    "tpu.trace_start"() <{level = 10 : i32, message = "hqk,hkd->hqd"}> : () -> ()
    %cst_16 = arith.constant dense<0.000000e+00> : vector<4x8x8xf32>
    %48 = tpu.matmul %46, %47, %cst_16 {dimension_numbers = #tpu.dot_dimension_numbers<[2], [1], [1], [2], [0, 0, 0, 1, 1, 2], [0], [0]>} : vector<4x8x8xbf16>, vector<4x8x8xbf16>, vector<4x8x8xf32> -> vector<4x8x8xf32>
    "tpu.trace_stop"() : () -> ()
    %49 = tpu.transpose %48, [1, 0, 2] : vector<4x8x8xf32> -> vector<8x4x8xf32>
    %50 = vector.shape_cast %49 : vector<8x4x8xf32> to vector<8x32xf32>
    %51 = arith.truncf %50 : vector<8x32xf32> to vector<8x32xbf16>
    %c0_17 = arith.constant 0 : index
    %c0_18 = arith.constant 0 : index
    %52 = vector.load %arg5[%c0_17, %c0_18] : memref<32x128xbf16, #tpu.memory_space<vmem>>, vector<32x128xbf16>
    %cst_19 = arith.constant dense<0.000000e+00> : vector<8x128xf32>
    %53 = tpu.matmul %51, %52, %cst_19 {dimension_numbers = #tpu.dot_dimension_numbers<[1], [0], [0], [1], [0, 0, 1, 1], [], []>} : vector<8x32xbf16>, vector<32x128xbf16>, vector<8x128xf32> -> vector<8x128xf32>
    %54 = arith.addf %1, %53 : vector<8x128xf32>
    %55 = arith.mulf %54, %54 : vector<8x128xf32>
    %cst_20 = arith.constant dense<0.000000e+00> : vector<8xf32>
    %56 = vector.multi_reduction <add>, %55, %cst_20 [1] : vector<8x128xf32> to vector<8xf32>
    %57 = vector.shape_cast %56 : vector<8xf32> to vector<8x1xf32>
    %cst_21 = arith.constant 3.125000e-02 : f32
    %58 = vector.broadcast %cst_21 : f32 to vector<8x1xf32>
    %59 = arith.mulf %57, %58 : vector<8x1xf32>
    %cst_22 = arith.constant 9.99999974E-6 : f32
    %60 = vector.broadcast %cst_22 : f32 to vector<8x1xf32>
    %61 = arith.addf %59, %60 : vector<8x1xf32>
    %62 = math.rsqrt %61 : vector<8x1xf32>
    %63 = vector.broadcast %62 : vector<8x1xf32> to vector<8x128xf32>
    %64 = arith.mulf %54, %63 : vector<8x128xf32>
    %c0_23 = arith.constant 0 : index
    %c0_24 = arith.constant 0 : index
    %65 = vector.load %arg6[%c0_23, %c0_24] : memref<1x128xf32, #tpu.memory_space<vmem>>, vector<1x128xf32>
    %66 = vector.broadcast %65 : vector<1x128xf32> to vector<8x128xf32>
    %67 = arith.mulf %64, %66 : vector<8x128xf32>
    %68 = arith.truncf %67 : vector<8x128xf32> to vector<8x128xbf16>
    %c0_25 = arith.constant 0 : index
    %c0_26 = arith.constant 0 : index
    %69 = vector.load %arg7[%c0_25, %c0_26] : memref<128x128xbf16, #tpu.memory_space<vmem>>, vector<128x128xbf16>
    %cst_27 = arith.constant dense<0.000000e+00> : vector<8x128xf32>
    %70 = tpu.matmul %68, %69, %cst_27 {dimension_numbers = #tpu.dot_dimension_numbers<[1], [0], [0], [1], [0, 0, 1, 1], [], []>} : vector<8x128xbf16>, vector<128x128xbf16>, vector<8x128xf32> -> vector<8x128xf32>
    %71 = arith.truncf %70 : vector<8x128xf32> to vector<8x128xbf16>
    %c0_28 = arith.constant 0 : index
    %c0_29 = arith.constant 0 : index
    %72 = vector.load %arg8[%c0_28, %c0_29] : memref<128x128xbf16, #tpu.memory_space<vmem>>, vector<128x128xbf16>
    %cst_30 = arith.constant dense<0.000000e+00> : vector<8x128xf32>
    %73 = tpu.matmul %71, %72, %cst_30 {dimension_numbers = #tpu.dot_dimension_numbers<[1], [0], [0], [1], [0, 0, 1, 1], [], []>} : vector<8x128xbf16>, vector<128x128xbf16>, vector<8x128xf32> -> vector<8x128xf32>
    %c0_31 = arith.constant 0 : index
    %c0_32 = arith.constant 0 : index
    %74 = vector.load %arg9[%c0_31, %c0_32] : memref<1x128xf32, #tpu.memory_space<vmem>>, vector<1x128xf32>
    %75 = vector.broadcast %74 : vector<1x128xf32> to vector<8x128xf32>
    %76 = arith.addf %73, %75 : vector<8x128xf32>
    %77 = vector.extract_strided_slice %76 {offsets = [0, 0], sizes = [8, 64], strides = [1, 1]} : vector<8x128xf32> to vector<8x64xf32>
    %78 = vector.extract_strided_slice %76 {offsets = [0, 64], sizes = [8, 64], strides = [1, 1]} : vector<8x128xf32> to vector<8x64xf32>
    %79 = arith.negf %77 : vector<8x64xf32>
    %80 = math.exp %79 : vector<8x64xf32>
    %cst_33 = arith.constant 1.000000e+00 : f32
    %81 = vector.broadcast %cst_33 : f32 to vector<8x64xf32>
    %82 = arith.addf %81, %80 : vector<8x64xf32>
    %83 = arith.divf %81, %82 : vector<8x64xf32>
    %84 = arith.mulf %77, %83 : vector<8x64xf32>
    %85 = arith.mulf %84, %78 : vector<8x64xf32>
    %86 = arith.truncf %85 : vector<8x64xf32> to vector<8x64xbf16>
    %c0_34 = arith.constant 0 : index
    %c0_35 = arith.constant 0 : index
    %87 = vector.load %arg10[%c0_34, %c0_35] : memref<64x128xbf16, #tpu.memory_space<vmem>>, vector<64x128xbf16>
    %cst_36 = arith.constant dense<0.000000e+00> : vector<8x128xf32>
    %88 = tpu.matmul %86, %87, %cst_36 {dimension_numbers = #tpu.dot_dimension_numbers<[1], [0], [0], [1], [0, 0, 1, 1], [], []>} : vector<8x64xbf16>, vector<64x128xbf16>, vector<8x128xf32> -> vector<8x128xf32>
    %89 = arith.addf %54, %88 : vector<8x128xf32>
    %c0_37 = arith.constant 0 : index
    %c0_38 = arith.constant 0 : index
    %c0_39 = arith.constant 0 : index
    %90 = vector.load %arg11[%c0_37, %c0_38, %c0_39] : memref<1x8x128xf32, #tpu.memory_space<vmem>>, vector<1x8x128xf32>
    %91 = vector.shape_cast %90 : vector<1x8x128xf32> to vector<8x128xf32>
    %92 = vector.shape_cast %89 : vector<8x128xf32> to vector<1x8x128xf32>
    tpu.vector_store %arg11[%c0_37, %c0_38, %c0_39], %92 {strides = array<i32>} : memref<1x8x128xf32, #tpu.memory_space<vmem>>, vector<1x8x128xf32>,
    return
  }
  func.func @transform_0(%arg0: i32) -> (i32, i32, i32) {
    %c0_i32 = arith.constant 0 : i32
    %c0_i32_0 = arith.constant 0 : i32
    %c0_i32_1 = arith.constant 0 : i32
    return %arg0, %c0_i32, %c0_i32_0 : i32, i32, i32
  }
  func.func @transform_1(%arg0: i32) -> (i32, i32, i32) {
    %c0_i32 = arith.constant 0 : i32
    %c0_i32_0 = arith.constant 0 : i32
    %c0_i32_1 = arith.constant 0 : i32
    return %arg0, %c0_i32, %c0_i32_0 : i32, i32, i32
  }
  func.func @transform_2(%arg0: i32) -> (i32, i32) {
    %c0_i32 = arith.constant 0 : i32
    %c0_i32_0 = arith.constant 0 : i32
    %c0_i32_1 = arith.constant 0 : i32
    return %c0_i32, %c0_i32_0 : i32, i32
  }
  func.func @transform_3(%arg0: i32) -> (i32, i32) {
    %c0_i32 = arith.constant 0 : i32
    %c0_i32_0 = arith.constant 0 : i32
    %c0_i32_1 = arith.constant 0 : i32
    return %c0_i32, %c0_i32_0 : i32, i32
  }
  func.func @transform_4(%arg0: i32) -> (i32, i32) {
    %c0_i32 = arith.constant 0 : i32
    %c0_i32_0 = arith.constant 0 : i32
    %c0_i32_1 = arith.constant 0 : i32
    return %c0_i32, %c0_i32_0 : i32, i32
  }
  func.func @transform_5(%arg0: i32) -> (i32, i32) {
    %c0_i32 = arith.constant 0 : i32
    %c0_i32_0 = arith.constant 0 : i32
    %c0_i32_1 = arith.constant 0 : i32
    return %c0_i32, %c0_i32_0 : i32, i32
  }
  func.func @transform_6(%arg0: i32) -> (i32, i32) {
    %c0_i32 = arith.constant 0 : i32
    %c0_i32_0 = arith.constant 0 : i32
    %c0_i32_1 = arith.constant 0 : i32
    return %c0_i32, %c0_i32_0 : i32, i32
  }
  func.func @transform_7(%arg0: i32) -> (i32, i32) {
    %c0_i32 = arith.constant 0 : i32
    %c0_i32_0 = arith.constant 0 : i32
    %c0_i32_1 = arith.constant 0 : i32
    return %c0_i32, %c0_i32_0 : i32, i32
  }
  func.func @transform_8(%arg0: i32) -> (i32, i32) {
    %c0_i32 = arith.constant 0 : i32
    %c0_i32_0 = arith.constant 0 : i32
    %c0_i32_1 = arith.constant 0 : i32
    return %c0_i32, %c0_i32_0 : i32, i32
  }
  func.func @transform_9(%arg0: i32) -> (i32, i32) {
    %c0_i32 = arith.constant 0 : i32
    %c0_i32_0 = arith.constant 0 : i32
    %c0_i32_1 = arith.constant 0 : i32
    return %c0_i32, %c0_i32_0 : i32, i32
  }
  func.func @transform_10(%arg0: i32) -> (i32, i32, i32) {
    %c0_i32 = arith.constant 0 : i32
    %c0_i32_0 = arith.constant 0 : i32
    %c0_i32_1 = arith.constant 0 : i32
    return %arg0, %c0_i32, %c0_i32_0 : i32, i32, i32
  }
}

</mosaic_0001>

<bundles_post_ra>
// kernel: tpu_custom_call.1
= control target key start
LH: loop header
LB: loop body
LE: loop exit
PB: predicated region body
PF: predicated region fallthrough
CT: control target
= control target key end

     0   :  { %s3404_s0 = inlined_call_operand.hbm [shape: f32[2,8,128], index: 0, kind: input, shape index: {}]   ;;  %s3405_s1 = inlined_call_operand.vmem [shape: f32[2,1,8], index: 1, kind: input, shape index: {}]   ;;  %s3406_s2 = inlined_call_operand.hbm [shape: f32[1,128], index: 2, kind: input, shape index: {}]   ;;  %s3407_s3 = inlined_call_operand.vmem [shape: bf16[128,96], index: 3, kind: input, shape index: {}]   ;;  %s3408_s4 = inlined_call_operand.hbm [shape: bf16[32,128], index: 4, kind: input, shape index: {}]   ;;  %s3409_s5 = inlined_call_operand.hbm [shape: f32[1,128], index: 5, kind: input, shape index: {}]   ;;  %s3410_s6 = inlined_call_operand.vmem [shape: bf16[128,128], index: 6, kind: input, shape index: {}]   ;;  %s3411_s7 = inlined_call_operand.vmem [shape: bf16[128,128], index: 7, kind: input, shape index: {}]   ;;  %s3412_s8 = inlined_call_operand.vmem [shape: f32[1,128], index: 8, kind: input, shape index: {}]   ;;  %s3413_s9 = inlined_call_operand.hbm [shape: bf16[64,128], index: 9, kind: input, shape index: {}]   ;;  %s3414_s10 = inlined_call_operand.hbm [shape: f32[2,8,128], index: 10, kind: output, shape index: {}]  }
   0x1   :  { %3418 = sst [smem:[#allocation16_spill]] %s3406_s2 }
   0x2   :  { %3419 = sst [smem:[#allocation17_spill]] %s3408_s4 }
   0x3   :  { %3420 = sst [smem:[#allocation18_spill]] %s3409_s5 }
   0x4   :  { %15 = vsyncpa [#allocation3], 0 }
   0x5   :  { %17 = vsyncpa [#allocation3 + $0x1], 0 }
   0x6   :  { %18 = vsyncpa [#allocation6], 0 }
   0x7   :  { %19 = vsyncpa [#allocation9], 0 }
   0x8   :  { %20 = vsyncpa [#allocation4], 0 }
   0x9   :  { %22 = vsyncpa [#allocation4 + $0x1], 0  ;;  %s2821_s13 = smov 0   ;;  %s2823_s14 = smov 0  }
   0xa   :  { %s2825_s15 = smov 0   ;;  %s2827_s16 = smov 0  }
   0xb LB: > { %s2746_s17 = smov [#allocation5]   ;;  %s2842_s19 = sadd.s32 4294967295, %s2744_s16   ;;  %s2744_s16 = sphi %s2827_s16, %s3444_s16   ;;  %s2740_s15 = sphi %s2825_s15, %s3443_s15   ;;  %s2736_s14 = sphi %s2823_s14, %s3442_s14   ;;  %s2732_s13 = sphi %s2821_s13, %s3441_s13  }
   0xc   : > { %s292_s18 = sshll.u32 %s2746_s17, 4  ;;  %p2122_p0 = scmp.ge.s32.totalorder %s2744_s16, 1  ;;  %s2847_s18 = int_to_ptr.vmem [resolvable:$true] %s292_s18 }
   0xd   : > { %p3415_p1 = scmp.eq.s32.totalorder %s2842_s19, 0  ;;  %p279_p2 = scmp.lt.s32.totalorder %s2744_s16, 3 }
   0xe   : > { %s2747_s21 = smov [#allocation8]   ;;  %s2748_s23 = smov [#allocation7]  }
   0xf   : > { %p2849_p3 = pnand %p2122_p0, %p279_p2  ;;  %s319_s22 = sshll.u32 %s2747_s21, 4  ;;  %s2856_s22 = int_to_ptr.vmem [resolvable:$true] %s319_s22 }
  0x10   : > { %s305_s24 = sshll.u32 %s2748_s23, 4  ;;  %s3423_s2 = sld [smem:[#allocation16_spill]]  ;;  %s2864_s24 = int_to_ptr.vmem [resolvable:$true] %s305_s24 }
  0x11   : > { %s3421_s20 = scalar_select %p2849_p3, 1, 0 }
  0x12   : > { %p2393_p5 = pneg %p2849_p3 }
  0x14   : > { %p2860_p6 = pnand %p2393_p5, %p3415_p1 }
  0x16   : > { %s2528_s28 = scalar_lea.hbm %s3423_s2, 16  ;;  %p2874_p8 = pneg %p2860_p6 }
  0x17   : > { %p2529_p7 = scmp.ne.s32.totalorder %s3423_s2, %s2528_s28  ;;  %p2535_p11 = scmp.lt.u32.totalorder %s2528_s28, %s3423_s2 }
  0x19   : > { %p2531_p9 = pnand %p2874_p8, %p2529_p7 }
  0x1b   : > { %p2532_p10 = pneg %p2531_p9 }
  0x1d   : > { %p2537_p12 = pnand %p2535_p11, %p2532_p10 }
  0x1f   : > { %2540 = shalt.err (!%p2537_p12)
}
  0x20   : > { %s2541_s21 = scalar_lea.vmem %s2847_s18, 16  ;;  %s2548_s23 = scalar_lea.vmem %s2847_s18, 32 }
  0x21   : > { %p2542_p13 = scmp.ne.s32.totalorder %s2847_s18, %s2541_s21  ;;  %p2549_p5 = scmp.lt.s32.totalorder %s2847_s18, %s2847_s18 }
  0x22   : > { %p2550_p7 = scmp.lt.s32.totalorder %s2548_s23, %s2541_s21 }
  0x23   : > { %p2544_p0 = pnand %p2542_p13, %p2874_p8 }
  0x24   : > { %p2551_p9 = por %p2550_p7, %p2549_p5 }
  0x25   : > { %p2545_p2 = pneg %p2544_p0 }
  0x27   : > { %p2552_p4 = pnand %p2551_p9, %p2545_p2 }
  0x29   : > { %2555 = shalt.err (!%p2552_p4)
}
  0x2a   : > { %2396 = dma.hbm_to_vmem [thread:$0]  (!%p2860_p6), %s3423_s2, 16, %s2847_s18, [#allocation6]  }
  0x2b   : > { %s3425_s5 = sld [smem:[#allocation18_spill]] }
  0x31   : > { %s2556_s30 = scalar_lea.hbm %s3425_s5, 16 }
  0x32   : > { %p2557_p10 = scmp.ne.s32.totalorder %s3425_s5, %s2556_s30  ;;  %p2563_p4 = scmp.lt.u32.totalorder %s2556_s30, %s3425_s5 }
  0x34   : > { %p2559_p11 = pnand %p2557_p10, %p2874_p8 }
  0x36   : > { %p2560_p12 = pneg %p2559_p11 }
  0x38   : > { %p2565_p13 = pnand %p2563_p4, %p2560_p12 }
  0x3a   : > { %2568 = shalt.err (!%p2565_p13)
}
  0x3b   : > { %s2569_s18 = scalar_lea.vmem %s2856_s22, 16  ;;  %s2576_s26 = scalar_lea.vmem %s2856_s22, 32 }
  0x3c   : > { %p2570_p0 = scmp.ne.s32.totalorder %s2856_s22, %s2569_s18  ;;  %p2577_p7 = scmp.lt.s32.totalorder %s2856_s22, %s2856_s22 }
  0x3d   : > { %p2578_p9 = scmp.lt.s32.totalorder %s2576_s26, %s2569_s18 }
  0x3e   : > { %p2572_p2 = pnand %p2570_p0, %p2874_p8 }
  0x3f   : > { %p2579_p10 = por %p2578_p9, %p2577_p7 }
  0x40   : > { %p2573_p5 = pneg %p2572_p2 }
  0x42   : > { %p2580_p11 = pnand %p2579_p10, %p2573_p5 }
  0x44   : > { %2583 = shalt.err (!%p2580_p11)
}
  0x45   : > { %2402 = dma.hbm_to_vmem [thread:$0]  (!%p2860_p6), %s3425_s5, 16, %s2856_s22, [#allocation9]  }
  0x46   : > { %s3426_s4 = sld [smem:[#allocation17_spill]] }
  0x4c   : > { %s2584_s12 = scalar_lea.hbm %s3426_s4, 256 }
  0x4d   : > { %p2585_p12 = scmp.ne.s32.totalorder %s3426_s4, %s2584_s12  ;;  %p2591_p0 = scmp.lt.u32.totalorder %s2584_s12, %s3426_s4 }
  0x4f   : > { %p2587_p4 = pnand %p2585_p12, %p2874_p8 }
  0x51   : > { %p2588_p13 = pneg %p2587_p4 }
  0x53   : > { %p2593_p2 = pnand %p2591_p0, %p2588_p13 }
  0x55   : > { %2596 = shalt.err (!%p2593_p2)
}
  0x56   : > { %s2597_s22 = scalar_lea.vmem %s2864_s24, 256  ;;  %p2605_p10 = scmp.lt.s32.totalorder %s2864_s24, %s2864_s24 }
  0x57   : > { %p2598_p5 = scmp.ne.s32.totalorder %s2864_s24, %s2597_s22  ;;  %p2606_p11 = scmp.lt.s32.totalorder %s2597_s22, %s2597_s22 }
  0x59   : > { %p2600_p7 = pnand %p2598_p5, %p2874_p8  ;;  %p2607_p12 = por %p2606_p11, %p2605_p10 }
  0x5b   : > { %p2601_p9 = pneg %p2600_p7 }
  0x5d   : > { %p2608_p4 = pnand %p2607_p12, %p2601_p9 }
  0x5f   : > { %2611 = shalt.err (!%p2608_p4)
}
  0x60   : > { %s2749_s26 = smov 64   ;;  %s2750_s27 = smov 4  }
  0x61   : > { %2399 = dma.hbm_to_vmem [thread:$0]  (!%p2860_p6), %s3426_s4, 256, %s2864_s24, [#allocation6], %s2749_s26, %s2749_s26, %s2750_s27  }
  0x62   : > { %s2751_s30 = smov [#allocation10]   ;;  %s2612_s23 = scalar_lea.hbm %s3413_s9, 512 }
  0x63   : > { %s338_s12 = sshll.u32 %s2751_s30, 4  ;;  %p2613_p13 = scmp.ne.s32.totalorder %s3413_s9, %s2612_s23  ;;  %s339_s12 = int_to_ptr.vmem [resolvable:$true] %s338_s12 }
  0x64   : > { %p2619_p5 = scmp.lt.u32.totalorder %s2612_s23, %s3413_s9 }
  0x65   : > { %p2615_p0 = pnand %p2613_p13, %p2874_p8 }
  0x67   : > { %p2616_p2 = pneg %p2615_p0 }
  0x69   : > { %p2621_p7 = pnand %p2619_p5, %p2616_p2 }
  0x6b   : > { %2624 = shalt.err (!%p2621_p7)
}
  0x6c   : > { %s2625_s24 = scalar_lea.vmem %s339_s12, 512  ;;  %p2633_p12 = scmp.lt.s32.totalorder %s339_s12, %s339_s12 }
  0x6d   : > { %p2626_p9 = scmp.ne.s32.totalorder %s339_s12, %s2625_s24  ;;  %p2634_p4 = scmp.lt.s32.totalorder %s2625_s24, %s2625_s24 }
  0x6f   : > { %p2628_p10 = pnand %p2626_p9, %p2874_p8  ;;  %p2635_p1 = por %p2634_p4, %p2633_p12 }
  0x71   : > { %p2629_p11 = pneg %p2628_p10 }
  0x73   : > { %p2636_p3 = pnand %p2635_p1, %p2629_p11 }
  0x75   : > { %2639 = shalt.err (!%p2636_p3)
}
  0x76   : > { %2405 = dma.hbm_to_vmem [thread:$0]  (!%p2860_p6), %s3413_s9, 512, %s339_s12, [#allocation9], %s2749_s26, %s2749_s26, %s2750_s27  }
  0x77   : > { %s2121_s2 = sadd.s32 4294967294, %s2744_s16   ;;  %s2963_s5 = sadd.s32 1, %s2744_s16  }
  0x78   : > { %s32_s25 = ssub.s32 %s2744_s16, %s2963_s5  ;;  %s35_s11 = sadd.s32 1, %s2740_s15 }
  0x79   : > { %p33_p1 = scmp.eq.s32.totalorder %s32_s25, 0  ;;  %p42_p3 = scmp.ne.s32.totalorder %s2740_s15, %s2736_s14 }
  0x7a   : > { %p43_p8 = scmp.eq.s32.totalorder %s2744_s16, 0  ;;  %p48_p13 = scmp.ne.s32.totalorder %s2736_s14, %s2732_s13 }
  0x7b   : > { %s2974_s30 = scalar_select %p33_p1, %s2740_s15, %s35_s11  }
  0x7c   : > { %p2976_p0 = por %p43_p8, %p42_p3  ;;  %p3428_p2 = scmp.eq.s32.totalorder %s2842_s19, 0 }
  0x7d   : > { %p266_p5 = scmp.eq.s32.totalorder %s2842_s19, 1  ;;  %p272_p7 = scmp.eq.s32.totalorder %s2121_s2, 1 }
  0x7e   : > { %p2982_p6 = por %p3428_p2, %p48_p13  ;;  %p2418_p9 = scmp.lt.s32.totalorder %s2744_s16, 2 }
  0x7f   : > { %s352_s27 = sand.u32 1, %s2740_s15   ;;  %p2989_p10 = por %p266_p5, %p42_p3 }
  0x80   : > { %p2993_p11 = por %p272_p7, %p48_p13  ;;  %s2128_s23 = sshll.u32 %s352_s27, 3 }
  0x81   : > { %s3430_s12 = scalar_select %p2989_p10, 1, 0 }
  0x82   : > { %s3431_s21 = scalar_select %p2993_p11, 1, 0 }
  0x83   : > { %s2129_s18 = sshll.u32 %s2744_s16, 7  ;;  %s356_s29 = scalar_lea.vmem [#allocation2], %s2128_s23 }
  0x84   : > { %s3001_s28 = scalar_lea.hbm %s3404_s0, %s2129_s18  ;;  %s363_s2 = sshll.u32 %s356_s29, 4  ;;  %s3003_s2 = int_to_ptr.vmem [resolvable:$true] %s363_s2 }
  0x85   : > { %p3007_p12 = pnand %p2418_p9, %p2976_p0  ;;  %s353_s11 = scalar_lea.sflag [#allocation3], %s352_s27 }
  0x86   : > { %s2640_s4 = scalar_lea.hbm %s3001_s28, 128  ;;  %s2645_s22 = scalar_lea.hbm %s3404_s0, 256 }
  0x87   : > { %p2641_p4 = scmp.ne.s32.totalorder %s3001_s28, %s2640_s4  ;;  %p2642_p1 = pneg %p3007_p12 }
  0x88   : > { %p2646_p13 = scmp.lt.u32.totalorder %s3001_s28, %s3404_s0  ;;  %p2647_p0 = scmp.lt.u32.totalorder %s2645_s22, %s2640_s4 }
  0x89   : > { %p2643_p3 = pnand %p2642_p1, %p2641_p4  ;;  %p2649_p5 = scmp.lt.u32.totalorder %s2640_s4, %s3001_s28 }
  0x8a   : > { %p2648_p2 = por %p2647_p0, %p2646_p13 }
  0x8b   : > { %p2644_p8 = pneg %p2643_p3 }
  0x8c   : > { %p2650_p7 = por %p2649_p5, %p2648_p2 }
  0x8e   : > { %p2651_p9 = pnand %p2650_p7, %p2644_p8 }
  0x90   : > { %2654 = shalt.err (!%p2651_p9)
}
  0x91   : > { %s2655_s27 = scalar_lea.vmem %s3003_s2, 128  ;;  %s2752_s29 = smov [#allocation2]  }
  0x92   : > { %p2656_p4 = scmp.ne.s32.totalorder %s3003_s2, %s2655_s27  ;;  %s2660_s23 = sshll.u32 %s2752_s29, 4  ;;  %s2661_s23 = int_to_ptr.vmem [resolvable:$false] %s2660_s23 }
  0x93   : > { %s2662_s18 = scalar_lea.vmem %s2661_s23, 256  ;;  %p2663_p10 = scmp.lt.s32.totalorder %s3003_s2, %s2661_s23 }
  0x94   : > { %p2658_p3 = pnand %p2656_p4, %p2642_p1  ;;  %p2664_p13 = scmp.lt.s32.totalorder %s2662_s18, %s2655_s27 }
  0x96   : > { %p2659_p11 = pneg %p2658_p3  ;;  %p2665_p0 = por %p2664_p13, %p2663_p10 }
  0x98   : > { %p2666_p2 = pnand %p2665_p0, %p2659_p11 }
  0x9a   : > { %2669 = shalt.err (!%p2666_p2)
}
  0x9b   : > { %2409 = dma.hbm_to_vmem [thread:$0]  (!%p3007_p12), %s3001_s28, 128, %s3003_s2, %s353_s11  }
  0x9c   : > { %p3433_p8 = scmp.ne.s32.totalorder %s3421_s20, 0 }
  0x9d   : > { %s3039_s4 = sand.u32 (!%p3433_p8), 1, %s2736_s14  }
  0x9e   : > { %378 = sbr.rel (%p3433_p8) target bundleno = 2915 (0xb63), region = 60  ;;  %s2131_s22 = sshll.u32 (!%p3433_p8), %s3039_s4, 3 }
  0x9f   : > { %s381_s17 = scalar_lea.sflag (!%p3433_p8), [#allocation3], %s3039_s4  ;;  %s384_s24 = scalar_lea.vmem (!%p3433_p8), [#allocation2], %s2131_s22 }
  0xa5   : > { %2715 = dma.done.wait (%p2982_p6), %s381_s17, 128  }
  0xa6   : > { %2717 = vsyncadd (%p2982_p6), %s381_s17, 4294967168  ;;  %p3434_p10 = scmp.eq.s32.totalorder %s2842_s19, 0 }
  0xa8   : > { %2719 = dma.done.wait (%p3434_p10), [#allocation6], 272   ;;  %p3435_p11 = pmov %p3434_p10 }
  0xa9   : > { %p3436_p12 = pmov %p3434_p10 }
  0xaa   : > { %2721 = vsyncadd (%p3435_p11), [#allocation6], 4294967024 }
  0xab   : > { %2723 = dma.done.wait (%p3436_p12), [#allocation9], 528   ;;  %p3437_p1 = pmov %p3434_p10 }
  0xac   : > { %v2753_v0 = vmov 0.0   ;;  %v3059_v1 = vld [vmem:[%s384_s24] sm:$0xff]  ;;  %v2476_v5 = vld [vmem:[%s3407_s3 + $0x10] sm:$0xff]   ;;  %v2477_v6 = vld [vmem:[%s3407_s3 + $0x18] sm:$0xff]   ;;  %vm2754_vm0 = vmmov 0   ;;  %s2755_s25 = smov 112   ;;  %v581_v28 = vlaneseq }
  0xad   : > { %2725 = vsyncadd (%p3437_p1), [#allocation9], 4294966768  ;;  %2245 = vmatprep.subr.bf16.mxu0 %v2753_v0  ;;  %2265 = vmatprep.subr.bf16.mxu1 %v2753_v0  ;;  %v446_v2 = vmul.f32 %v3059_v1, %v3059_v1  ;;  %v2474_v3 = vld [vmem:[%s3407_s3] sm:$0xff]   ;;  %v2475_v4 = vld [vmem:[%s3407_s3 + $0x8] sm:$0xff]   ;;  %s2756_s11 = smov 120   ;;  %s2757_s27 = smov 104  }
  0xae   : > { %2246 = vmatpush3.bf16.msra.mxu0 %v2474_v3  ;;  %v2478_v7 = vld [vmem:[%s3407_s3 + $0x20] sm:$0xff]   ;;  %2261 = vmatprep.mubr.msk.bf16.mxu0 %vm2754_vm0, %v2753_v0  ;;  %v2479_v8 = vld [vmem:[%s3407_s3 + $0x28] sm:$0xff]   ;;  %v2480_v9 = vld [vmem:[%s3407_s3 + $0x30] sm:$0xff]   ;;  %s2758_s29 = smov 96   ;;  %v2759_v26 = vmov 1983009808  }
  0xaf   : > { %447 = vadd.xlane.f32.xlu0 %v446_v2  ;;  %2247 = vmatprep.subr.bf16.mxu0 %v2753_v0  ;;  %v2481_v10 = vld [vmem:[%s3407_s3 + $0x38] sm:$0xff]   ;;  %v2137_v15 = vld [vmem:[#allocation5] ss:$0 sm:$0xff]  ;;  %v579_v27 = vunpack.c.l.s4 %v2759_v26  ;;  %v582_v30 = vshrl.u32 %v581_v28, 7  ;;  %v2760_v32 = vmov 1934713408  }
  0xb0   : > { %2267 = vmatprep.mubr.msk.bf16.mxu1 %vm2754_vm0, %v2753_v0  ;;  %v611_v33 = vunpack.c.l.s4 %v2760_v32  ;;  %vm1016_vm1 = vcmask 64512   ;;  %p440_p6 = scmp.lt.s32.totalorder %s2842_s19, 1  ;;  %s2761_s20 = smov 64   ;;  %vm1270_vm2 = vcmask 1043456   ;;  %vm1601_vm3 = vcmask 130048  }
  0xb1   : > { %v580_v29 = vunpack.c.0.s8 %v579_v27  ;;  %s2762_s26 = smov 16   ;;  %s2763_s28 = smov 8   ;;  %vm1603_vm4 = vcmask 195584   ;;  %vm1622_vm5 = vcmask 261120   ;;  %vm1944_vm6 = vcmask 523264  }
  0xb2   : > { %2248 = vmatpush3.bf16.msra.mxu0 %v2475_v4  ;;  %v612_v40 = vunpack.c.0.s8 %v611_v33  ;;  %s441_s23 = scalar_select %p440_p6, %s2842_s19, 1 }
  0xb3   : > { %2249 = vmatprep.subr.bf16.mxu0 %v2753_v0  ;;  %v3121_v36 = vsub.s32 %v580_v29, %v582_v30  ;;  %s2764_s2 = smov 24   ;;  %p3438_p7 = scmp.ne.s32.totalorder %s3430_s12, 0 }
  0xb4   : > { %v3131_v46 = vsub.s32 %v612_v40, %v582_v30  ;;  %s442_s24 = scalar_lea.vmem %s3405_s1, %s441_s23  ;;  %s2765_s17 = smov [#allocation11]  }
  0xb6   : > { %2250 = vmatpush3.bf16.msra.mxu0 %v2476_v5 }
  0xb7   : > { %2251 = vmatprep.subr.bf16.mxu0 %v2753_v0 }
  0xba   : > { %2252 = vmatpush3.bf16.msra.mxu0 %v2477_v6 }
  0xbb   : > { %2253 = vmatprep.subr.bf16.mxu0 %v2753_v0 }
  0xbe   : > { %2254 = vmatpush3.bf16.msra.mxu0 %v2478_v7 }
  0xbf   : > { %2255 = vmatprep.subr.bf16.mxu0 %v2753_v0 }
  0xc2   : > { %2256 = vmatpush3.bf16.msra.mxu0 %v2479_v8 }
  0xc3   : > { %2257 = vmatprep.subr.bf16.mxu0 %v2753_v0 }
  0xc6   : > { %2258 = vmatpush3.bf16.msra.mxu0 %v2480_v9 }
  0xc7   : > { %2259 = vmatprep.subr.bf16.mxu0 %v2753_v0 }
  0xca   : > { %2260 = vmatpush3.bf16.msra.mxu0 %v2481_v10 }
  0xcb   : > { %2289 = vmatprep.subr.bf16.mxu0 %v2753_v0 }
 0x13c   : > { %v448_v11 = vpop.xlane.xlu0 %447 }
 0x13d   : > { %v449_v12 = vmul.f32 0.03125, %v448_v11 }
 0x13f   : > { %v450_v13 = vadd.f32 1e-05, %v449_v12 }
 0x141   : > { %2504 = vrsqrt.f32 %v450_v13 }
 0x14b   : > { %v2505_v14 = vpop.eup %2504 }
 0x14c   : > { %v452_v16 = vmul.f32 %v2505_v14, %v3059_v1 }
 0x14e   : > { %v460_v17 = vmul.f32 %v2137_v15, %v452_v16 }
 0x150   : > { %v461_v18 = vpack.c.bf16 %v460_v17, %v460_v17 }
 0x152   : > { %2262 = vmatmul.mubr.bf16.vlgmr.msra.gmra.mrb[0].mxu0 %v461_v18 }
 0x153   : > { %2291 = vmatprep.mubr.msk.bf16.mxu0 %vm2754_vm0, %v2753_v0 }
 0x225   : > { %v3102_v19 = vpop.f32.mrb[0].mxu0 }
 0x226   : > { %570 = vrot.lane.b32.xlu1 %v3102_v19, %s2755_s25  ;;  %567 = vrot.lane.b32.xlu0 %v3102_v19, %s2756_s11  ;;  %v2263_v20 = vpop.f32.mrb[1].mxu0  ;;  %s2191_s11 = sshll.u32 %s2842_s19, 7  ;;  %s1991_s19 = scalar_lea.sflag [#allocation4], %s3039_s4 }
 0x227   : > { %v563_v21 = vpop.f32.mrb[2].mxu0  ;;  %s3360_s18 = scalar_lea.hbm %s3414_s10, %s2191_s11 }
 0x228   : > { %v2264_v22 = vpop.f32.mrb[3].mxu0 }
 0x22a   : > { %573 = vrot.lane.b32.xlu1 %v3102_v19, %s2757_s27  ;;  %s439_s27 = scalar_lea.vmem [#allocation11], %s2131_s22 }
 0x22e   : > { %712 = vrot.lane.b32.xlu1 %v3102_v19, %s2758_s29 }
 0x298   : > { %v3108_v23 = vpop.permute.xlu0 %567  ;;  %v3111_v24 = vpop.permute.xlu1 %570 }
 0x299   : > { %714 = vrot.lane.b32.xlu1 %v3108_v23, %s2758_s29  ;;  %v576_v37 = vcombine.low %v3102_v19, %v3111_v24  ;;  %v577_v38 = vcombine.high %v3102_v19, %v3111_v24 }
 0x29b   : > { %v584_v43 = vrot.slane %v576_v37, %v3121_v36  ;;  %v591_v44 = vrot.slane %v577_v38, %v3121_v36 }
 0x29c   : > { %v3114_v25 = vpop.permute.xlu1 %573 }
 0x29d   : > { %716 = vrot.lane.b32.xlu1 %v3111_v24, %s2758_s29  ;;  %v592_v34 = vcombine.low %v3108_v23, %v3114_v25  ;;  %v593_v35 = vcombine.high %v3108_v23, %v3114_v25 }
 0x29f   : > { %v600_v41 = vrot.slane %v592_v34, %v3121_v36  ;;  %v607_v42 = vrot.slane %v593_v35, %v3121_v36 }
 0x2a0   : > { %v713_v31 = vpop.permute.xlu1 %712 }
 0x2a1   : > { %718 = vrot.lane.b32.xlu1 %v3114_v25, %s2758_s29  ;;  %v608_v47 = vcombine.low %v584_v43, %v600_v41  ;;  %v609_v48 = vcombine.high %v584_v43, %v600_v41  ;;  %v624_v49 = vcombine.low %v591_v44, %v607_v42  ;;  %v625_v50 = vcombine.high %v591_v44, %v607_v42  ;;  %s2004_s29 = sshll.u32 %s439_s27, 4  ;;  %s3362_s29 = int_to_ptr.vmem [resolvable:$true] %s2004_s29 }
 0x2a2   : > { %s2670_s22 = scalar_lea.vmem %s3362_s29, 128 }
 0x2a3   : > { %v616_v56 = vrot.slane %v608_v47, %v3131_v46  ;;  %v623_v57 = vrot.slane %v609_v48, %v3131_v46  ;;  %v632_v58 = vrot.slane %v624_v49, %v3131_v46  ;;  %v639_v59 = vrot.slane %v625_v50, %v3131_v46  ;;  %p2671_p5 = scmp.ne.s32.totalorder %s3362_s29, %s2670_s22 }
 0x2a5   : > { %v644_v6 = vcombine.low %v616_v56, %v623_v57  ;;  %v2146_v7 = vcombine.high %v616_v56, %v623_v57  ;;  %v660_v8 = vcombine.low %v632_v58, %v639_v59  ;;  %v2147_v9 = vcombine.high %v632_v58, %v639_v59  ;;  %p2672_p9 = pnand %p2671_p5, %p3438_p7 }
 0x2a7   : > { %v651_v18 = vrot.slane %v644_v6, %v3121_v36  ;;  %v659_v20 = vrot.slane %v2146_v7, %v3121_v36  ;;  %v667_v21 = vrot.slane %v660_v8, %v3121_v36  ;;  %v675_v22 = vrot.slane %v2147_v9, %v3121_v36  ;;  %v2156_v7 = vld [vmem:[%s442_s24] ss:$0 sm:$0xff]  ;;  %p2673_p4 = pneg %p2672_p9  ;;  %s2674_s24 = sshll.u32 %s2765_s17, 4  ;;  %s2675_s24 = int_to_ptr.vmem [resolvable:$false] %s2674_s24 }
 0x2a8   : > { %p2677_p3 = scmp.lt.s32.totalorder %s3362_s29, %s2675_s24 }
 0x2a9   : > { %v676_v34 = vcombine.low %v651_v18, %v659_v20  ;;  %v692_v35 = vcombine.low %v667_v21, %v675_v22 }
 0x2ab   : > { %v700_v40 = vrot.slane %v692_v35, %v3131_v46 }
 0x30b   : > { %v715_v39 = vpop.permute.xlu1 %714 }
 0x30f   : > { %v717_v45 = vpop.permute.xlu1 %716 }
 0x310   : > { %v724_v51 = vcombine.low %v713_v31, %v717_v45  ;;  %v725_v52 = vcombine.high %v713_v31, %v717_v45 }
 0x312   : > { %v732_v60 = vrot.slane %v724_v51, %v3121_v36  ;;  %v739_v61 = vrot.slane %v725_v52, %v3121_v36 }
 0x313   : > { %v719_v53 = vpop.permute.xlu1 %718 }
 0x314   : > { %v740_v54 = vcombine.low %v715_v39, %v719_v53  ;;  %v741_v55 = vcombine.high %v715_v39, %v719_v53  ;;  %v684_v39 = vrot.slane %v676_v34, %v3131_v46  ;;  %v677_v53 = vcombine.high %v651_v18, %v659_v20 }
 0x316   : > { %v748_v62 = vrot.slane %v740_v54, %v3121_v36  ;;  %v755_v63 = vrot.slane %v741_v55, %v3121_v36  ;;  %v708_v45 = vcombine.low %v684_v39, %v700_v40  ;;  %v693_v54 = vcombine.high %v667_v21, %v675_v22 }
 0x317   : > { %v709_v55 = vcombine.high %v684_v39, %v700_v40  ;;  %v691_v58 = vrot.slane %v677_v53, %v3131_v46 }
 0x318   : > { %v756_v2 = vcombine.low %v732_v60, %v748_v62  ;;  %v757_v3 = vcombine.high %v732_v60, %v748_v62  ;;  %v772_v4 = vcombine.low %v739_v61, %v755_v63  ;;  %v773_v5 = vcombine.high %v739_v61, %v755_v63 }
 0x319   : > { %v1008_v50 = vpack.c.bf16 %v708_v45, %v708_v45  ;;  %v1009_v57 = vpack.c.bf16 %v709_v55, %v709_v55  ;;  %v707_v59 = vrot.slane %v693_v54, %v3131_v46 }
 0x31a   : > { %v764_v10 = vrot.slane %v756_v2, %v3131_v46  ;;  %v771_v11 = vrot.slane %v757_v3, %v3131_v46  ;;  %v780_v12 = vrot.slane %v772_v4, %v3131_v46  ;;  %v787_v13 = vrot.slane %v773_v5, %v3131_v46 }
 0x31b   : > { %v710_v62 = vcombine.low %v691_v58, %v707_v59  ;;  %v711_v4 = vcombine.high %v691_v58, %v707_v59 }
 0x31c   : > { %v792_v14 = vcombine.low %v764_v10, %v771_v11  ;;  %v2148_v15 = vcombine.high %v764_v10, %v771_v11  ;;  %v808_v16 = vcombine.low %v780_v12, %v787_v13  ;;  %v2149_v17 = vcombine.high %v780_v12, %v787_v13 }
 0x31d   : > { %v1010_v2 = vpack.c.bf16 %v710_v62, %v710_v62  ;;  %v1011_v5 = vpack.c.bf16 %v711_v4, %v711_v4 }
 0x31e   : > { %v799_v26 = vrot.slane %v792_v14, %v3121_v36  ;;  %v807_v27 = vrot.slane %v2148_v15, %v3121_v36  ;;  %v815_v28 = vrot.slane %v808_v16, %v3121_v36  ;;  %v823_v29 = vrot.slane %v2149_v17, %v3121_v36 }
 0x320   : > { %v824_v30 = vcombine.low %v799_v26, %v807_v27  ;;  %v840_v31 = vcombine.low %v815_v28, %v823_v29  ;;  %v825_v43 = vcombine.high %v799_v26, %v807_v27  ;;  %v841_v44 = vcombine.high %v815_v28, %v823_v29 }
 0x322   : > { %v832_v32 = vrot.slane %v824_v30, %v3131_v46  ;;  %v848_v33 = vrot.slane %v840_v31, %v3131_v46  ;;  %v839_v48 = vrot.slane %v825_v43, %v3131_v46  ;;  %v855_v49 = vrot.slane %v841_v44, %v3131_v46 }
 0x324   : > { %v856_v37 = vcombine.low %v832_v32, %v848_v33  ;;  %v857_v42 = vcombine.high %v832_v32, %v848_v33  ;;  %v858_v52 = vcombine.low %v839_v48, %v855_v49  ;;  %v859_v61 = vcombine.high %v839_v48, %v855_v49 }
 0x326   : > { %v1012_v38 = vpack.c.bf16 %v856_v37, %v856_v37  ;;  %v1013_v47 = vpack.c.bf16 %v857_v42, %v857_v42  ;;  %v1014_v56 = vpack.c.bf16 %v858_v52, %v858_v52  ;;  %v1015_v63 = vpack.c.bf16 %v859_v61, %v859_v61 }
 0x328   : > { %v1021_v41 = vsel %vm1016_vm1, %v1012_v38, 0  ;;  %v1067_v51 = vsel %vm1016_vm1, %v1013_v47, 0  ;;  %v1113_v60 = vsel %vm1016_vm1, %v1014_v56, 0  ;;  %v1159_v3 = vsel %vm1016_vm1, %v1015_v63, 0 }
 0x329   : > { %2266 = vmatpush3.bf16.xpose.msra.mxu1 %v1021_v41 }
 0x32a   : > { %2271 = vmatprep.subr.bf16.mxu1 %v2753_v0 }
 0x330   : > { %2268 = vmatmul.mubr.msk.bf16.vlgmr.msra.gmra.mrb[0].mxu1 %vm1016_vm1, %v1008_v50 }
 0x331   : > { %2272 = vmatpush3.bf16.xpose.msra.mxu1 %v1067_v51  ;;  %2273 = vmatprep.mubr.msk.bf16.mxu1 %vm2754_vm0, %v2753_v0 }
 0x332   : > { %2277 = vmatprep.subr.bf16.mxu1 %v2753_v0 }
 0x338   : > { %2274 = vmatmul.mubr.msk.bf16.vlgmr.msra.gmra.mrb[4].mxu1 %vm1016_vm1, %v1009_v57 }
 0x339   : > { %2278 = vmatpush3.bf16.xpose.msra.mxu1 %v1113_v60  ;;  %2279 = vmatprep.mubr.msk.bf16.mxu1 %vm2754_vm0, %v2753_v0 }
 0x33a   : > { %2283 = vmatprep.subr.bf16.mxu1 %v2753_v0 }
 0x340   : > { %2280 = vmatmul.mubr.msk.bf16.vlgmr.msra.gmra.mrb[8].mxu1 %vm1016_vm1, %v1010_v2 }
 0x341   : > { %2284 = vmatpush3.bf16.xpose.msra.mxu1 %v1159_v3  ;;  %2285 = vmatprep.mubr.msk.bf16.mxu1 %vm2754_vm0, %v2753_v0 }
 0x342   : > { %2295 = vmatprep.subr.bf16.mxu1 %v2753_v0 }
 0x348   : > { %2286 = vmatmul.mubr.msk.bf16.vlgmr.msra.gmra.mrb[12].mxu1 %vm1016_vm1, %v1011_v5 }
 0x349   : > { %2297 = vmatprep.mubr.msk.bf16.mxu1 %vm2754_vm0, %v2753_v0 }
 0x403   : > { %v1057_v6 = vpop.f32.mrb[0].mxu1 }
 0x404   : > { %v1201_v8 = vmul.f32 0.35355338, %v1057_v6  ;;  %v2269_v9 = vpop.f32.mrb[1].mxu1 }
 0x405   : > { %v1060_v10 = vpop.f32.mrb[2].mxu1 }
 0x406   : > { %v2270_v11 = vpop.f32.mrb[3].mxu1  ;;  %v1211_v12 = vadd.f32 %v2156_v7, %v1201_v8 }
 0x408   : > { %v1215_v13 = vsel %vm1016_vm1, %v1211_v12, -inf }
 0x409   : > { %1216 = vmax.xlane.f32.xlu1 %v1215_v13 }
 0x40b   : > { %v1103_v14 = vpop.f32.mrb[4].mxu1 }
 0x40c   : > { %v1202_v15 = vmul.f32 0.35355338, %v1103_v14  ;;  %v2275_v16 = vpop.f32.mrb[5].mxu1 }
 0x40d   : > { %v1106_v17 = vpop.f32.mrb[6].mxu1 }
 0x40e   : > { %v2276_v18 = vpop.f32.mrb[7].mxu1  ;;  %v1212_v20 = vadd.f32 %v2156_v7, %v1202_v15 }
 0x410   : > { %v1218_v21 = vsel %vm1016_vm1, %v1212_v20, -inf }
 0x411   : > { %1219 = vmax.xlane.f32.xlu0 %v1218_v21 }
 0x413   : > { %v1149_v22 = vpop.f32.mrb[8].mxu1 }
 0x414   : > { %v1203_v26 = vmul.f32 0.35355338, %v1149_v22  ;;  %v2281_v27 = vpop.f32.mrb[9].mxu1 }
 0x415   : > { %v1152_v28 = vpop.f32.mrb[10].mxu1 }
 0x416   : > { %v2282_v29 = vpop.f32.mrb[11].mxu1  ;;  %v1213_v30 = vadd.f32 %v2156_v7, %v1203_v26 }
 0x418   : > { %v1221_v31 = vsel %vm1016_vm1, %v1213_v30, -inf }
 0x419   : > { %1222 = vmax.xlane.f32.xlu0 %v1221_v31 }
 0x41b   : > { %v1195_v32 = vpop.f32.mrb[12].mxu1 }
 0x41c   : > { %v1204_v33 = vmul.f32 0.35355338, %v1195_v32  ;;  %v2287_v34 = vpop.f32.mrb[13].mxu1 }
 0x41d   : > { %v1198_v35 = vpop.f32.mrb[14].mxu1 }
 0x41e   : > { %v2288_v37 = vpop.f32.mrb[15].mxu1  ;;  %v1214_v38 = vadd.f32 %v2156_v7, %v1204_v33 }
 0x420   : > { %v1224_v39 = vsel %vm1016_vm1, %v1214_v38, -inf }
 0x421   : > { %1225 = vmax.xlane.f32.xlu1 %v1224_v39 }
 0x42f   : > { %860 = vrot.lane.b32.xlu0 %v3102_v19, %s2761_s20 }
 0x432   : > { %862 = vrot.lane.b32.xlu1 %v3108_v23, %s2761_s20 }
 0x496   : > { %v1217_v40 = vpop.xlane.xlu1 %1216 }
 0x497   : > { %v1227_v41 = vsub.f32 %v1211_v12, %v1217_v40 }
 0x499   : > { %v1231_v42 = vmul.f32 1.442695, %v1227_v41 }
 0x49b   : > { %2506 = vpow2.f32 %v1231_v42 }
 0x49e   : > { %v1220_v43 = vpop.xlane.xlu0 %1219 }
 0x49f   : > { %v1228_v44 = vsub.f32 %v1212_v20, %v1220_v43 }
 0x4a1   : > { %v1233_v45 = vmul.f32 1.442695, %v1228_v44 }
 0x4a3   : > { %2508 = vpow2.f32 %v1233_v45 }
 0x4a5   : > { %v3194_v47 = vpop.eup %2506 }
 0x4a6   : > { %v1239_v48 = vsel %vm1016_vm1, %v3194_v47, 0.0  ;;  %v1223_v52 = vpop.xlane.xlu0 %1222 }
 0x4a7   : > { %1240 = vadd.xlane.f32.xlu0 %v1239_v48  ;;  %v1229_v53 = vsub.f32 %v1213_v30, %v1223_v52 }
 0x4a9   : > { %v1235_v54 = vmul.f32 1.442695, %v1229_v53 }
 0x4ad   : > { %v3198_v49 = vpop.eup %2508 }
 0x4ae   : > { %v1242_v19 = vsel %vm1016_vm1, %v3198_v49, 0.0  ;;  %v1226_v23 = vpop.xlane.xlu1 %1225 }
 0x4af   : > { %1243 = vadd.xlane.f32.xlu1 %v1242_v19  ;;  %v1230_v50 = vsub.f32 %v1214_v38, %v1226_v23 }
 0x4b1   : > { %v1237_v51 = vmul.f32 1.442695, %v1230_v50 }
 0x4b2   : > { %v863_v59 = vpop.permute.xlu1 %862 }
 0x4b3   : > { %2510 = vpow2.f32 %v1237_v51 }
 0x4b4   : > { %2512 = vpow2.f32 %v1235_v54 }
 0x4bd   : > { %866 = vrot.lane.b32.xlu0 %v3114_v25, %s2761_s20  ;;  %v3206_v55 = vpop.eup %2510 }
 0x4be   : > { %v1248_v56 = vsel %vm1016_vm1, %v3206_v55, 0.0  ;;  %v3210_v57 = vpop.eup %2512 }
 0x4bf   : > { %v1245_v25 = vsel %vm1016_vm1, %v3210_v57, 0.0 }
 0x4c0   : > { %864 = vrot.lane.b32.xlu1 %v3111_v24, %s2761_s20  ;;  %v861_v24 = vpop.permute.xlu0 %860 }
 0x4dc   : > { %1249 = vadd.xlane.f32.xlu0 %v1248_v56 }
 0x4e4   : > { %1246 = vadd.xlane.f32.xlu1 %v1245_v25 }
 0x534   : > { %v1241_v58 = vpop.xlane.xlu0 %1240 }
 0x535   : > { %2514 = vrcp.f32 %v1241_v58 }
 0x538   : > { %v867_v60 = vpop.permute.xlu0 %866 }
 0x539   : > { %v888_v62 = vcombine.low %v863_v59, %v867_v60  ;;  %v889_v63 = vcombine.high %v863_v59, %v867_v60 }
 0x53b   : > { %v896_v5 = vrot.slane %v888_v62, %v3121_v36  ;;  %v903_v6 = vrot.slane %v889_v63, %v3121_v36 }
 0x53c   : > { %v1244_v61 = vpop.xlane.xlu1 %1243 }
 0x53d   : > { %2516 = vrcp.f32 %v1244_v61 }
 0x53f   : > { %v2515_v33 = vpop.eup %2514 }
 0x540   : > { %v865_v2 = vpop.permute.xlu1 %864  ;;  %v1252_v44 = vmul.f32 %v2515_v33, %v3194_v47 }
 0x541   : > { %v872_v3 = vcombine.low %v861_v24, %v865_v2  ;;  %v873_v4 = vcombine.high %v861_v24, %v865_v2 }
 0x542   : > { %v1259_v53 = vpack.c.bf16 %v1252_v44, %v1252_v44 }
 0x543   : > { %v880_v7 = vrot.slane %v872_v3, %v3121_v36  ;;  %v887_v8 = vrot.slane %v873_v4, %v3121_v36 }
 0x545   : > { %v904_v9 = vcombine.low %v880_v7, %v896_v5  ;;  %v905_v10 = vcombine.high %v880_v7, %v896_v5  ;;  %v920_v11 = vcombine.low %v887_v8, %v903_v6  ;;  %v921_v12 = vcombine.high %v887_v8, %v903_v6 }
 0x547   : > { %v912_v13 = vrot.slane %v904_v9, %v3131_v46  ;;  %v919_v14 = vrot.slane %v905_v10, %v3131_v46  ;;  %v928_v15 = vrot.slane %v920_v11, %v3131_v46  ;;  %v935_v16 = vrot.slane %v921_v12, %v3131_v46  ;;  %v2517_v39 = vpop.eup %2516 }
 0x548   : > { %v1254_v45 = vmul.f32 %v2517_v39, %v3198_v49 }
 0x549   : > { %v940_v17 = vcombine.low %v912_v13, %v919_v14  ;;  %v2150_v18 = vcombine.high %v912_v13, %v919_v14  ;;  %v956_v20 = vcombine.low %v928_v15, %v935_v16  ;;  %v2151_v21 = vcombine.high %v928_v15, %v935_v16 }
 0x54a   : > { %v1260_v54 = vpack.c.bf16 %v1254_v45, %v1254_v45 }
 0x54b   : > { %v947_v22 = vrot.slane %v940_v17, %v3121_v36  ;;  %v955_v26 = vrot.slane %v2150_v18, %v3121_v36  ;;  %v963_v27 = vrot.slane %v956_v20, %v3121_v36  ;;  %v971_v28 = vrot.slane %v2151_v21, %v3121_v36 }
 0x54d   : > { %v972_v29 = vcombine.low %v947_v22, %v955_v26  ;;  %v988_v30 = vcombine.low %v963_v27, %v971_v28  ;;  %v973_v31 = vcombine.high %v947_v22, %v955_v26  ;;  %v989_v32 = vcombine.high %v963_v27, %v971_v28  ;;  %v2482_v27 = vld [vmem:[#allocation7] sm:$0xff]  }
 0x54f   : > { %v980_v34 = vrot.slane %v972_v29, %v3131_v46  ;;  %v996_v35 = vrot.slane %v988_v30, %v3131_v46  ;;  %v987_v37 = vrot.slane %v973_v31, %v3131_v46  ;;  %v1003_v38 = vrot.slane %v989_v32, %v3131_v46 }
 0x551   : > { %v1004_v40 = vcombine.low %v980_v34, %v996_v35  ;;  %v1005_v41 = vcombine.high %v980_v34, %v996_v35  ;;  %v1006_v42 = vcombine.low %v987_v37, %v1003_v38  ;;  %v1007_v43 = vcombine.high %v987_v37, %v1003_v38  ;;  %v2483_v37 = vld [vmem:[#allocation7 + $0x8] sm:$0xff]  }
 0x553   : > { %v1263_v48 = vpack.c.bf16 %v1004_v40, %v1004_v40  ;;  %v1264_v19 = vpack.c.bf16 %v1005_v41, %v1005_v41  ;;  %v1265_v51 = vpack.c.bf16 %v1006_v42, %v1006_v42  ;;  %v1266_v52 = vpack.c.bf16 %v1007_v43, %v1007_v43 }
 0x555   : > { %v1272_v23 = vsel %vm1270_vm2, %v1263_v48, 0  ;;  %v1318_v50 = vsel %vm1270_vm2, %v1264_v19, 0  ;;  %v1364_v47 = vsel %vm1270_vm2, %v1265_v51, 0  ;;  %v1410_v49 = vsel %vm1270_vm2, %v1266_v52, 0 }
 0x556   : > { %2290 = vmatpush3.bf16.msra.mxu0 %v1272_v23  ;;  %2296 = vmatpush3.bf16.msra.mxu1 %v1318_v50 }
 0x557   : > { %2301 = vmatprep.subr.bf16.mxu0 %v2753_v0  ;;  %2307 = vmatprep.subr.bf16.mxu1 %v2753_v0 }
 0x559   : > { %2292 = vmatmul.mubr.msk.bf16.vlgmr.msra.gmra.mrb[4].mxu0 %vm1016_vm1, %v1259_v53  ;;  %2298 = vmatmul.mubr.msk.bf16.vlgmr.msra.gmra.mrb[16].mxu1 %vm1016_vm1, %v1260_v54 }
 0x55a   : > { %2302 = vmatpush3.bf16.msra.mxu0 %v1364_v47  ;;  %2308 = vmatpush3.bf16.msra.mxu1 %v1410_v49 }
 0x55b   : > { %2309 = vmatprep.mubr.msk.bf16.mxu1 %vm2754_vm0, %v2753_v0  ;;  %2303 = vmatprep.mubr.msk.bf16.mxu0 %vm2754_vm0, %v2753_v0 }
 0x55c   : > { %2313 = vmatprep.subr.bf16.mxu0 %v2753_v0  ;;  %2321 = vmatprep.subr.bf16.mxu1 %v2753_v0 }
 0x569   : > { %v1250_v56 = vpop.xlane.xlu0 %1249 }
 0x56a   : > { %2518 = vrcp.f32 %v1250_v56 }
 0x571   : > { %v1247_v25 = vpop.xlane.xlu1 %1246 }
 0x572   : > { %2520 = vrcp.f32 %v1247_v25 }
 0x574   : > { %v2519_v24 = vpop.eup %2518 }
 0x575   : > { %v1258_v58 = vmul.f32 %v2519_v24, %v3206_v55 }
 0x577   : > { %v1262_v59 = vpack.c.bf16 %v1258_v58, %v1258_v58 }
 0x579   : > { %2310 = vmatmul.mubr.msk.bf16.vlgmr.msra.gmra.mrb[20].mxu1 %vm1016_vm1, %v1262_v59 }
 0x57a   : > { %2337 = vmatprep.mubr.msk.bf16.mxu1 %vm2754_vm0, %v2753_v0 }
 0x57c   : > { %v2521_v60 = vpop.eup %2520 }
 0x57d   : > { %v1256_v61 = vmul.f32 %v2521_v60, %v3210_v57 }
 0x57f   : > { %v1261_v62 = vpack.c.bf16 %v1256_v61, %v1256_v61 }
 0x581   : > { %2304 = vmatmul.mubr.msk.bf16.vlgmr.msra.gmra.mrb[8].mxu0 %vm1016_vm1, %v1261_v62  ;;  %v2484_v62 = vld [vmem:[%s3410_s6] sm:$0xff]  }
 0x582   : > { %2317 = vmatprep.mubr.msk.bf16.mxu0 %vm2754_vm0, %v2753_v0  ;;  %2314 = vmatpush3.bf16.msra.mxu0 %v2482_v27 }
 0x583   : > { %2315 = vmatprep.subr.bf16.mxu0 %v2753_v0  ;;  %2322 = vmatpush3.bf16.msra.mxu1 %v2484_v62 }
 0x584   : > { %2323 = vmatprep.subr.bf16.mxu1 %v2753_v0 }
 0x586   : > { %2316 = vmatpush3.bf16.msra.mxu0 %v2483_v37  ;;  %v2500_v37 = vld [vmem:[#allocation10] sm:$0xff]  }
 0x587   : > { %2341 = vmatprep.subr.bf16.mxu0 %v2753_v0 }
 0x62c   : > { %v1308_v63 = vpop.f32.mrb[4].mxu0  ;;  %v1354_v2 = vpop.f32.mrb[16].mxu1 }
 0x62d   : > { %v2293_v3 = vpop.f32.mrb[5].mxu0  ;;  %v2299_v4 = vpop.f32.mrb[17].mxu1 }
 0x62e   : > { %v1311_v55 = vpop.f32.mrb[6].mxu0  ;;  %v1357_v5 = vpop.f32.mrb[18].mxu1 }
 0x62f   : > { %v2294_v6 = vpop.f32.mrb[7].mxu0  ;;  %v2300_v7 = vpop.f32.mrb[19].mxu1 }
 0x64c   : > { %v1446_v8 = vpop.f32.mrb[20].mxu1 }
 0x64d   : > { %v1468_v9 = vcombine.low %v1354_v2, %v1446_v8  ;;  %v1469_v10 = vcombine.high %v1354_v2, %v1446_v8  ;;  %v2311_v11 = vpop.f32.mrb[21].mxu1  ;;  %v2486_v2 = vld [vmem:[%s3410_s6 + $0x10] sm:$0xff]   ;;  %v2487_v8 = vld [vmem:[%s3410_s6 + $0x18] sm:$0xff]  }
 0x64e   : > { %v1449_v12 = vpop.f32.mrb[22].mxu1  ;;  %v2491_v11 = vld [vmem:[%s3410_s6 + $0x38] sm:$0xff]  }
 0x64f   : > { %v2312_v57 = vpop.f32.mrb[23].mxu1  ;;  %v1476_v18 = vrot.slane %v1468_v9, %v3121_v36  ;;  %v1483_v20 = vrot.slane %v1469_v10, %v3121_v36  ;;  %v2488_v9 = vld [vmem:[%s3410_s6 + $0x20] sm:$0xff]   ;;  %v2490_v10 = vld [vmem:[%s3410_s6 + $0x30] sm:$0xff]  }
 0x650   : > { %v2492_v12 = vld [vmem:[%s3411_s7] sm:$0xff]   ;;  %v2493_v57 = vld [vmem:[%s3411_s7 + $0x8] sm:$0xff]  }
 0x654   : > { %v1400_v13 = vpop.f32.mrb[8].mxu0 }
 0x655   : > { %v1452_v14 = vcombine.low %v1308_v63, %v1400_v13  ;;  %v1453_v15 = vcombine.high %v1308_v63, %v1400_v13  ;;  %v2305_v16 = vpop.f32.mrb[9].mxu0  ;;  %v2485_v63 = vld [vmem:[%s3410_s6 + $0x8] sm:$0xff]   ;;  %v2494_v13 = vld [vmem:[%s3411_s7 + $0x10] sm:$0xff]  }
 0x656   : > { %v1403_v17 = vpop.f32.mrb[10].mxu0  ;;  %2324 = vmatpush3.bf16.msra.mxu1 %v2485_v63  ;;  %v2497_v16 = vld [vmem:[%s3411_s7 + $0x28] sm:$0xff]  }
 0x657   : > { %v1460_v21 = vrot.slane %v1452_v14, %v3121_v36  ;;  %v1467_v22 = vrot.slane %v1453_v15, %v3121_v36  ;;  %v2306_v26 = vpop.f32.mrb[11].mxu0  ;;  %2325 = vmatprep.subr.bf16.mxu1 %v2753_v0  ;;  %v2495_v14 = vld [vmem:[%s3411_s7 + $0x18] sm:$0xff]   ;;  %v2496_v15 = vld [vmem:[%s3411_s7 + $0x20] sm:$0xff]   ;;  %v2498_v17 = vld [vmem:[%s3411_s7 + $0x30] sm:$0xff]  }
 0x658   : > { %v2166_v26 = vld [vmem:[#allocation8] ss:$0 sm:$0xff] }
 0x659   : > { %v1484_v28 = vcombine.low %v1460_v21, %v1476_v18  ;;  %v1485_v29 = vcombine.high %v1460_v21, %v1476_v18  ;;  %v1500_v30 = vcombine.low %v1467_v22, %v1483_v20  ;;  %v1501_v31 = vcombine.high %v1467_v22, %v1483_v20 }
 0x65a   : > { %2326 = vmatpush3.bf16.msra.mxu1 %v2486_v2 }
 0x65b   : > { %v1492_v32 = vrot.slane %v1484_v28, %v3131_v46  ;;  %v1499_v33 = vrot.slane %v1485_v29, %v3131_v46  ;;  %v1508_v34 = vrot.slane %v1500_v30, %v3131_v46  ;;  %v1515_v35 = vrot.slane %v1501_v31, %v3131_v46  ;;  %2327 = vmatprep.subr.bf16.mxu1 %v2753_v0  ;;  %v2499_v30 = vld [vmem:[%s3411_s7 + $0x38] sm:$0xff]  }
 0x65d   : > { %v1520_v38 = vcombine.low %v1492_v32, %v1499_v33  ;;  %v2161_v39 = vcombine.high %v1492_v32, %v1499_v33  ;;  %v1536_v40 = vcombine.low %v1508_v34, %v1515_v35  ;;  %v2162_v41 = vcombine.high %v1508_v34, %v1515_v35 }
 0x65e   : > { %2328 = vmatpush3.bf16.msra.mxu1 %v2487_v8 }
 0x65f   : > { %v1527_v42 = vrot.slane %v1520_v38, %v3121_v36  ;;  %v1535_v43 = vrot.slane %v2161_v39, %v3121_v36  ;;  %v1543_v44 = vrot.slane %v1536_v40, %v3121_v36  ;;  %v1551_v45 = vrot.slane %v2162_v41, %v3121_v36  ;;  %2329 = vmatprep.subr.bf16.mxu1 %v2753_v0  ;;  %v2501_v38 = vld [vmem:[#allocation10 + $0x8] sm:$0xff]   ;;  %v2502_v39 = vld [vmem:[#allocation10 + $0x10] sm:$0xff]   ;;  %v2503_v40 = vld [vmem:[#allocation10 + $0x18] sm:$0xff]  }
 0x660   : > { %v2175_v41 = vld [vmem:[%s3412_s8] ss:$0 sm:$0xff] }
 0x661   : > { %v1553_v48 = vcombine.high %v1527_v42, %v1535_v43  ;;  %v1569_v19 = vcombine.high %v1543_v44, %v1551_v45  ;;  %v1552_v23 = vcombine.low %v1527_v42, %v1535_v43  ;;  %v1568_v50 = vcombine.low %v1543_v44, %v1551_v45 }
 0x662   : > { %2330 = vmatpush3.bf16.msra.mxu1 %v2488_v9 }
 0x663   : > { %v1567_v51 = vrot.slane %v1553_v48, %v3131_v46  ;;  %v1583_v52 = vrot.slane %v1569_v19, %v3131_v46  ;;  %v1560_v53 = vrot.slane %v1552_v23, %v3131_v46  ;;  %v1576_v54 = vrot.slane %v1568_v50, %v3131_v46  ;;  %2331 = vmatprep.subr.bf16.mxu1 %v2753_v0 }
 0x665   : > { %v1586_v47 = vcombine.low %v1567_v51, %v1583_v52  ;;  %v1585_v49 = vcombine.high %v1560_v53, %v1576_v54  ;;  %v1587_v56 = vcombine.high %v1567_v51, %v1583_v52  ;;  %v1584_v25 = vcombine.low %v1560_v53, %v1576_v54 }
 0x667   : > { %1593 = vrot.lane.b32.xlu1 %v1586_v47, %s2762_s26  ;;  %1589 = vrot.lane.b32.xlu0 %v1585_v49, %s2763_s28  ;;  %s2676_s26 = scalar_lea.vmem %s2675_s24, 256 }
 0x668   : > { %p2678_p13 = scmp.lt.s32.totalorder %s2676_s26, %s2670_s22 }
 0x66a   : > { %p2679_p0 = por %p2678_p13, %p2677_p3 }
 0x66b   : > { %1597 = vrot.lane.b32.xlu1 %v1587_v56, %s2764_s2 }
 0x66c   : > { %p2680_p2 = pnand %p2679_p0, %p2673_p4 }
 0x6d9   : > { %v1594_v36 = vpop.permute.xlu1 %1593  ;;  %v1590_v24 = vpop.permute.xlu0 %1589 }
 0x6da   : > { %v1600_v58 = vsel %vm1016_vm1, %v1584_v25, %v1590_v24 }
 0x6db   : > { %v1602_v60 = vsel %vm1601_vm3, %v1600_v58, %v1594_v36 }
 0x6dd   : > { %v1598_v59 = vpop.permute.xlu1 %1597 }
 0x6de   : > { %v1604_v61 = vsel %vm1603_vm4, %v1602_v60, %v1598_v59 }
 0x6df   : > { %v1605_v46 = vpack.c.bf16 %v1604_v61, %v1604_v61 }
 0x6e1   : > { %2318 = vmatmul.mubr.msk.bf16.vlgmr.msra.gmra.mrb[12].mxu0 %vm1622_vm5, %v1605_v46 }
 0x6e2   : > { %2357 = vmatprep.mubr.msk.bf16.mxu0 %vm2754_vm0, %v2753_v0  ;;  %2342 = vmatpush3.bf16.msra.mxu0 %v2492_v12 }
 0x6e3   : > { %2343 = vmatprep.subr.bf16.mxu0 %v2753_v0 }
 0x6e6   : > { %2344 = vmatpush3.bf16.msra.mxu0 %v2493_v57 }
 0x6e7   : > { %2345 = vmatprep.subr.bf16.mxu0 %v2753_v0 }
 0x6ea   : > { %2346 = vmatpush3.bf16.msra.mxu0 %v2494_v13 }
 0x6eb   : > { %2347 = vmatprep.subr.bf16.mxu0 %v2753_v0 }
 0x6ee   : > { %2348 = vmatpush3.bf16.msra.mxu0 %v2495_v14 }
 0x6ef   : > { %2349 = vmatprep.subr.bf16.mxu0 %v2753_v0 }
 0x6f2   : > { %2350 = vmatpush3.bf16.msra.mxu0 %v2496_v15 }
 0x6f3   : > { %2351 = vmatprep.subr.bf16.mxu0 %v2753_v0 }
 0x6f6   : > { %2352 = vmatpush3.bf16.msra.mxu0 %v2497_v16 }
 0x6f7   : > { %2353 = vmatprep.subr.bf16.mxu0 %v2753_v0 }
 0x6fa   : > { %2354 = vmatpush3.bf16.msra.mxu0 %v2498_v17 }
 0x6fb   : > { %2355 = vmatprep.subr.bf16.mxu0 %v2753_v0 }
 0x6fe   : > { %2356 = vmatpush3.bf16.msra.mxu0 %v2499_v30 }
 0x7b4   : > { %v1660_v3 = vpop.f32.mrb[12].mxu0 }
 0x7b5   : > { %v3288_v4 = vadd.f32 %v1660_v3, %v3059_v1  ;;  %v2319_v55 = vpop.f32.mrb[13].mxu0  ;;  %v2489_v1 = vld [vmem:[%s3410_s6 + $0x28] sm:$0xff]  }
 0x7b6   : > { %v1663_v5 = vpop.f32.mrb[14].mxu0  ;;  %2332 = vmatpush3.bf16.msra.mxu1 %v2489_v1 }
 0x7b7   : > { %v2320_v6 = vpop.f32.mrb[15].mxu0  ;;  %v1667_v7 = vmul.f32 %v3288_v4, %v3288_v4  ;;  %2333 = vmatprep.subr.bf16.mxu1 %v2753_v0 }
 0x7b9   : > { %1668 = vadd.xlane.f32.xlu0 %v1667_v7 }
 0x7ba   : > { %2334 = vmatpush3.bf16.msra.mxu1 %v2490_v10 }
 0x7bb   : > { %2335 = vmatprep.subr.bf16.mxu1 %v2753_v0 }
 0x7be   : > { %2336 = vmatpush3.bf16.msra.mxu1 %v2491_v11 }
 0x7bf   : > { %2361 = vmatprep.subr.bf16.mxu1 %v2753_v0 }
 0x846   : > { %v1669_v18 = vpop.xlane.xlu0 %1668 }
 0x847   : > { %v1670_v20 = vmul.f32 0.03125, %v1669_v18 }
 0x849   : > { %v1671_v21 = vadd.f32 1e-05, %v1670_v20 }
 0x84b   : > { %2522 = vrsqrt.f32 %v1671_v21 }
 0x855   : > { %v2523_v22 = vpop.eup %2522 }
 0x856   : > { %v1673_v27 = vmul.f32 %v2523_v22, %v3288_v4 }
 0x858   : > { %v1681_v28 = vmul.f32 %v2166_v26, %v1673_v27 }
 0x85a   : > { %v1682_v29 = vpack.c.bf16 %v1681_v28, %v1681_v28 }
 0x85c   : > { %2338 = vmatmul.mubr.bf16.vlgmr.msra.gmra.mrb[24].mxu1 %v1682_v29 }
 0x85d   : > { %2369 = vmatprep.mubr.msk.bf16.mxu1 %vm2754_vm0, %v2753_v0  ;;  %2362 = vmatpush3.bf16.msra.mxu1 %v2500_v37 }
 0x85e   : > { %2363 = vmatprep.subr.bf16.mxu1 %v2753_v0 }
 0x861   : > { %2364 = vmatpush3.bf16.msra.mxu1 %v2501_v38 }
 0x862   : > { %2365 = vmatprep.subr.bf16.mxu1 %v2753_v0 }
 0x865   : > { %2366 = vmatpush3.bf16.msra.mxu1 %v2502_v39 }
 0x866   : > { %2367 = vmatprep.subr.bf16.mxu1 %v2753_v0 }
 0x869   : > { %2368 = vmatpush3.bf16.msra.mxu1 %v2503_v40 }
 0x92f   : > { %v1781_v31 = vpop.f32.mrb[24].mxu1 }
 0x930   : > { %v1787_v32 = vpack.c.bf16 %v1781_v31, %v1781_v31  ;;  %v2339_v33 = vpop.f32.mrb[25].mxu1 }
 0x931   : > { %v1784_v34 = vpop.f32.mrb[26].mxu1 }
 0x932   : > { %v2340_v35 = vpop.f32.mrb[27].mxu1  ;;  %2358 = vmatmul.mubr.bf16.vlgmr.msra.gmra.mrb[16].mxu0 %v1787_v32 }
 0xa05   : > { %v1893_v42 = vpop.f32.mrb[16].mxu0 }
 0xa06   : > { %v1894_v43 = vadd.f32 %v2175_v41, %v1893_v42  ;;  %v2359_v44 = vpop.f32.mrb[17].mxu0 }
 0xa07   : > { %v1896_v45 = vpop.f32.mrb[18].mxu0 }
 0xa08   : > { %1907 = vrot.lane.b32.xlu1 %v1894_v43, %s2761_s20  ;;  %v2360_v48 = vpop.f32.mrb[19].mxu0  ;;  %v2184_v19 = vmul.f32 -1.442695, %v1894_v43 }
 0xa0a   : > { %2524 = vpow2.f32 %v2184_v19 }
 0xa14   : > { %v2525_v23 = vpop.eup %2524 }
 0xa15   : > { %v1902_v50 = vadd.f32 1.0, %v2525_v23 }
 0xa17   : > { %2526 = vrcp.f32 %v1902_v50 }
 0xa21   : > { %v2527_v0 = vpop.eup %2526 }
 0xa22   : > { %v1905_v51 = vmul.f32 %v2527_v0, %v1894_v43 }
 0xa7a   : > { %v1908_v52 = vpop.permute.xlu1 %1907 }
 0xa7b   : > { %v1910_v53 = vmul.f32 %v1908_v52, %v1905_v51 }
 0xa7d   : > { %v1911_v54 = vpack.c.bf16 %v1910_v53, %v1910_v53 }
 0xa7f   : > { %2370 = vmatmul.mubr.msk.bf16.vlgmr.msra.gmra.mrb[28].mxu1 %vm1944_vm6, %v1911_v54 }
 0xb52   : > { %v1982_v47 = vpop.f32.mrb[28].mxu1 }
 0xb53   : > { %v1988_v49 = vadd.f32 %v1982_v47, %v3288_v4  ;;  %v2371_v56 = vpop.f32.mrb[29].mxu1 }
 0xb54   : > { %v1985_v25 = vpop.f32.mrb[30].mxu1 }
 0xb55   : > { %1989 = vst [vmem:[%s439_s27] sm:$0xff] %v1988_v49  ;;  %v2372_v36 = vpop.f32.mrb[31].mxu1 }
 0xb56   : > { %2683 = shalt.err (!%p2680_p2)
}
 0xb57   : > { %s2684_s4 = scalar_lea.hbm %s3360_s18, 128  ;;  %s2688_s25 = scalar_lea.hbm %s3414_s10, 256 }
 0xb58   : > { %p2685_p8 = scmp.ne.s32.totalorder %s3360_s18, %s2684_s4  ;;  %p2689_p12 = scmp.lt.u32.totalorder %s3360_s18, %s3414_s10 }
 0xb59   : > { %p2690_p1 = scmp.lt.u32.totalorder %s2688_s25, %s2684_s4  ;;  %p2692_p5 = scmp.lt.u32.totalorder %s2684_s4, %s3360_s18 }
 0xb5a   : > { %p2686_p10 = pnand %p2685_p8, %p3438_p7 }
 0xb5b   : > { %p2691_p6 = por %p2690_p1, %p2689_p12 }
 0xb5c   : > { %p2687_p11 = pneg %p2686_p10 }
 0xb5d   : > { %p2693_p9 = por %p2692_p5, %p2691_p6 }
 0xb5f   : > { %p2694_p4 = pnand %p2693_p9, %p2687_p11 }
 0xb61   : > { %2697 = shalt.err (!%p2694_p4)
}
 0xb62   : > { %2391 = dma.vmem_to_hbm [thread:$0]  (%p3438_p7), %s3362_s29, 128, %s3360_s18, %s1991_s19  }
 0xb63 PF: > { %s2016_s20 = sand.u32 1, %s2732_s13   ;;  %p3439_p3 = scmp.ne.s32.totalorder %s3431_s21, 0 }
 0xb64   : > { %p3440_p13 = scmp.ge.s32.totalorder %s2744_s16, 2  ;;  %s2017_s23 = scalar_lea.sflag [#allocation4], %s2016_s20 }
 0xb66   : > { %p2411_p0 = pnand %p3440_p13, %p3439_p3 }
 0xb68   : > { %2727 = dma.done.wait (!%p2411_p0), %s2017_s23, 128  }
 0xb69   : > { %2729 = vsyncadd (!%p2411_p0), %s2017_s23, 4294967168  ;;  %p25_p2 = scmp.ge.s32.totalorder %s2963_s5, 4   ;;  %s3441_s13 = smov %s2736_s14 }
 0xb6a   : > { %s3442_s14 = smov %s2740_s15  ;;  %s3443_s15 = smov %s2974_s30 }
 0xb6b   : > { %s3444_s16 = smov %s2963_s5  ;;  %27 = sbr.rel (!%p25_p2) target bundleno = 11 (0xb), region = 124 }
 0xb72   :  { %2022 = vsyncpa [#allocation3], 1 }
 0xb73   :  { %2024 = vsyncpa [#allocation3 + $0x1], 1 }
 0xb74   :  { %2025 = vsyncpa [#allocation6], 1 }
 0xb75   :  { %2026 = vsyncpa [#allocation9], 1 }
 0xb76   :  { %2027 = vsyncpa [#allocation4], 1 }
 0xb77   :  { %2029 = vsyncpa [#allocation4 + $0x1], 1 }

</bundles_post_ra>
